<compile_context>
chip_gen: v5e
topology: v5e:2x2
jax: 0.10.0
libtpu: 0.0.40
codegen_flags: <defaults>
</compile_context>

<pallas_src>
import functools

import jax
import jax.numpy as jnp
from jax import lax
from jax.experimental import pallas as pl
from jax.experimental.pallas import tpu as pltpu

HIDDEN = 110     # nn.LSTM(input_dim, 110)
HP = 128         # per-gate hidden size padded to the 128-lane vreg width
SUB = 8          # f32 sublane tile

# PyTorch gate order (i, f, g, o) -> kernel gate order (i, f, o, g)
_GATE_ORDER = (0, 1, 3, 2)


def _lstm_fc_kernel(x_ref, wih_ref, whh_ref, wfc_ref, bfc_ref,
                    out_ref, xg_scr, *, T, BB, unroll):
    """Shapes (per batch block of BB rows):
       x_ref : (T*BB, D+1)  bf16, time-major, ones column carries the bias
       wih   : (D+1, 4*HP)  bf16, gate order (i, f, o, g), bias row appended
       whh   : (HP, 4*HP)   bf16
       wfc   : (HP, OP)     bf16
       bfc   : (1, OP)      f32
       out   : (BB, OP)     f32
       xg_scr: (T*BB, 4*HP) f32 VMEM scratch for the hoisted input projection.
    """
    # ---- hoisted input projection (incl. bias): one bf16 MXU matmul --------
    xg_scr[...] = jnp.dot(x_ref[...], wih_ref[...],
                          preferred_element_type=jnp.float32)

    # ---- recurrence: h/c carried in vregs; only h @ W_hh on the chain ------
    def step(t, carry):
        h, c = carry
        row = pl.multiple_of(t * BB, BB)                       # sublane-aligned
        gates = (xg_scr[pl.ds(row, BB), :]
                 + jnp.dot(h.astype(jnp.bfloat16), whh_ref[...],
                           preferred_element_type=jnp.float32))   # (BB, 4*HP)
        # gate order (i, f, o, g): one contiguous sigmoid + one tanh (EUP)
        s = jax.nn.sigmoid(gates[:, :3 * HP])
        i = s[:, 0 * HP:1 * HP]
        f = s[:, 1 * HP:2 * HP]
        o = s[:, 2 * HP:3 * HP]
        g = jnp.tanh(gates[:, 3 * HP:])
        c = f * c + i * g
        h = o * jnp.tanh(c)
        return (h, c)

    h0 = jnp.zeros((BB, HP), jnp.float32)
    c0 = jnp.zeros((BB, HP), jnp.float32)
    h_T, _ = lax.fori_loop(0, T, step, (h0, c0), unroll=unroll)

    # ---- fc on the last-timestep hidden state -------------------------------
    out_ref[...] = (jnp.dot(h_T.astype(jnp.bfloat16), wfc_ref[...],
                            preferred_element_type=jnp.float32)
                    + bfc_ref[...])


def _prep_gate_cols(w):
    """(in, 4*HIDDEN) -> (in, 4*HP): reorder gates to (i,f,o,g), zero-pad to HP."""
    return jnp.concatenate(
        [jnp.pad(w[:, g * HIDDEN:(g + 1) * HIDDEN], ((0, 0), (0, HP - HIDDEN)))
         for g in _GATE_ORDER], axis=1)


def _prep_gate_vec(b):
    return jnp.concatenate(
        [jnp.pad(b[g * HIDDEN:(g + 1) * HIDDEN], (0, HP - HIDDEN))
         for g in _GATE_ORDER])


def _vmem_cap_bytes():
    try:
        return int(pltpu.get_tpu_info().vmem_capacity_bytes)
    except Exception:
        return 64 << 20          # v7x floor; safe on every generation


@jax.jit
def wide_lstm_net_forward(x, params):
    """x: (B, T, D) batch-first like PyTorch.  params are PyTorch-shaped."""
    w_ih, w_hh, b_ih, b_hh, w_fc, b_fc = params
    B, T, D = x.shape
    O = w_fc.shape[0]
    Dp1 = D + 1                                  # ones column carries the bias

    # batch blocking: fill MXU rows for large B, round to the sublane tile
    B8 = -(-B // SUB) * SUB
    BB = min(B8, 128)                            # batch rows per grid step
    nblocks = -(-B8 // BB)
    BP = nblocks * BB
    OP = -(-O // HP) * HP                        # lane-dense fc output

    # ---- weight prep: gate reorder+pad, bias folded, bf16 MXU operands -----
    wih = _prep_gate_cols(w_ih.T.astype(jnp.float32))                 # (D, 4*HP)
    b_row = (_prep_gate_vec(b_ih.astype(jnp.float32))
             + _prep_gate_vec(b_hh.astype(jnp.float32))).reshape(1, 4 * HP)
    wih = jnp.concatenate([wih, b_row], axis=0).astype(jnp.bfloat16)  # (Dp1, 4*HP)
    whh = _prep_gate_cols(w_hh.T.astype(jnp.float32))
    whh = jnp.pad(whh, ((0, HP - HIDDEN), (0, 0))).astype(jnp.bfloat16)  # (HP, 4*HP)
    wfc = jnp.pad(w_fc.T.astype(jnp.float32),
                  ((0, HP - HIDDEN), (0, OP - O))).astype(jnp.bfloat16)  # (HP, OP)
    bfc = jnp.pad(b_fc.astype(jnp.float32), (0, OP - O)).reshape(1, OP)

    # ---- input prep (fused under jit): ones col, time-major, batch blocks --
    x_aug = jnp.concatenate(
        [x.astype(jnp.float32), jnp.ones((B, T, 1), jnp.float32)], axis=-1)
    x_tm = jnp.transpose(x_aug, (1, 0, 2))                        # (T, B, Dp1)
    x_tm = jnp.pad(x_tm, ((0, 0), (0, BP - B), (0, 0)))           # (T, BP, Dp1)
    x_blk = (x_tm.reshape(T, nblocks, BB, Dp1)
             .transpose(1, 0, 2, 3)
             .reshape(nblocks, T * BB, Dp1)
             .astype(jnp.bfloat16))                               # (nb, T*BB, Dp1)

    # serial chain through h: cap the unroll once T gets large
    unroll = T if T <= 16 else 4

    # explicit VMEM budget, clamped by the generation's physical capacity
    needed = (2 * T * BB * Dp1 * 2                     # x block (double-buffered)
              + Dp1 * 4 * HP * 2 + HP * 4 * HP * 2     # wih, whh
              + HP * OP * 2 + OP * 4                   # wfc, bfc
              + 2 * BB * OP * 4                        # out block (double-buffered)
              + T * BB * 4 * HP * 4)                   # xg scratch
    vmem_limit = int(min(max(2 * needed, 32 << 20),
                         max(_vmem_cap_bytes() - (8 << 20), 16 << 20)))

    out = pl.pallas_call(
        functools.partial(_lstm_fc_kernel, T=T, BB=BB, unroll=unroll),
        grid=(nblocks,),
        out_shape=jax.ShapeDtypeStruct((nblocks, BB, OP), jnp.float32),
        in_specs=[
            pl.BlockSpec((None, T * BB, Dp1), lambda j: (j, 0, 0)),   # x block
            pl.BlockSpec((Dp1, 4 * HP), lambda j: (0, 0)),            # wih
            pl.BlockSpec((HP, 4 * HP), lambda j: (0, 0)),             # whh
            pl.BlockSpec((HP, OP), lambda j: (0, 0)),                 # wfc
            pl.BlockSpec((1, OP), lambda j: (0, 0)),                  # bfc
        ],
        out_specs=pl.BlockSpec((None, BB, OP), lambda j: (j, 0, 0)),
        scratch_shapes=[pltpu.VMEM((T * BB, 4 * HP), jnp.float32)],
        compiler_params=pltpu.CompilerParams(
            dimension_semantics=("parallel",),
            vmem_limit_bytes=vmem_limit),
    )(x_blk, wih, whh, wfc, bfc)

    return out.reshape(BP, OP)[:B, :O]


def _reference(x, params):
    """Pure-JAX f32 reference matching torch.nn.LSTM + Linear semantics."""
    w_ih, w_hh, b_ih, b_hh, w_fc, b_fc = params
    B, T, D = x.shape
    h = jnp.zeros((B, HIDDEN), jnp.float32)
    c = jnp.zeros((B, HIDDEN), jnp.float32)
    for t in range(T):
        gates = x[:, t, :] @ w_ih.T + h @ w_hh.T + b_ih + b_hh
        i = jax.nn.sigmoid(gates[:, :HIDDEN])
        f = jax.nn.sigmoid(gates[:, HIDDEN:2 * HIDDEN])
        g = jnp.tanh(gates[:, 2 * HIDDEN:3 * HIDDEN])
        o = jax.nn.sigmoid(gates[:, 3 * HIDDEN:])
        c = f * c + i * g
        h = o * jnp.tanh(c)
    return h @ w_fc.T + b_fc


if __name__ == "__main__":
    B, T, D, O = 2, 8, 16, 4          # batch, seq, input_dim, output_dim

    key = jax.random.PRNGKey(0)
    k = 1.0 / jnp.sqrt(HIDDEN)        # PyTorch default uniform(-1/sqrt(H), 1/sqrt(H))
    keys = jax.random.split(key, 7)
    w_ih = jax.random.uniform(keys[0], (4 * HIDDEN, D), jnp.float32, -k, k)
    w_hh = jax.random.uniform(keys[1], (4 * HIDDEN, HIDDEN), jnp.float32, -k, k)
    b_ih = jax.random.uniform(keys[2], (4 * HIDDEN,), jnp.float32, -k, k)
    b_hh = jax.random.uniform(keys[3], (4 * HIDDEN,), jnp.float32, -k, k)
    w_fc = jax.random.uniform(keys[4], (O, HIDDEN), jnp.float32, -k, k)
    b_fc = jax.random.uniform(keys[5], (O,), jnp.float32, -k, k)
    params = (w_ih, w_hh, b_ih, b_hh, w_fc, b_fc)

    x = jax.random.normal(keys[6], (B, T, D), jnp.float32)

    out = wide_lstm_net_forward(x, params)
    out = jax.block_until_ready(out)

    ref = _reference(x, params)
    assert out.shape == (B, O)
    # bf16 MXU operands -> small drift vs the f32 reference
    assert jnp.allclose(out, ref, atol=2e-2, rtol=2e-2), (out, ref)
    print("KERNEL_OK")
</pallas_src>

<mosaic_0001>
module attributes {stable_mosaic.version = 11 : i64} {
  func.func @_lstm_fc_kernel(%arg0: i32, %arg1: memref<1x64x17xbf16, #tpu.memory_space<vmem>>, %arg2: memref<17x512xbf16, #tpu.memory_space<vmem>>, %arg3: memref<128x512xbf16, #tpu.memory_space<vmem>>, %arg4: memref<128x128xbf16, #tpu.memory_space<vmem>>, %arg5: memref<1x128xf32, #tpu.memory_space<vmem>>, %arg6: memref<1x8x128xf32, #tpu.memory_space<vmem>>, %arg7: memref<64x512xf32, #tpu.memory_space<vmem>>) attributes {dimension_semantics = [#tpu.dimension_semantics<parallel>], iteration_bounds = array<i64: 1>, scalar_prefetch = 0 : i64, scratch_operands = 1 : i64, tpu.core_type = #tpu.core_type<tc>, window_params = [{transform_indices = @transform_0, window_bounds = array<i64: 1, 64, 17>}, {pipeline_mode = #tpu.pipeline_mode<synchronous>, transform_indices = @transform_1, window_bounds = array<i64: 17, 512>}, {pipeline_mode = #tpu.pipeline_mode<synchronous>, transform_indices = @transform_2, window_bounds = array<i64: 128, 512>}, {pipeline_mode = #tpu.pipeline_mode<synchronous>, transform_indices = @transform_3, window_bounds = array<i64: 128, 128>}, {pipeline_mode = #tpu.pipeline_mode<synchronous>, transform_indices = @transform_4, window_bounds = array<i64: 1, 128>}, {transform_indices = @transform_5, window_bounds = array<i64: 1, 8, 128>}]} {
    %c0 = arith.constant 0 : index
    %c0_0 = arith.constant 0 : index
    %c0_1 = arith.constant 0 : index
    %0 = vector.load %arg1[%c0, %c0_0, %c0_1] : memref<1x64x17xbf16, #tpu.memory_space<vmem>>, vector<1x64x17xbf16>
    %1 = vector.shape_cast %0 : vector<1x64x17xbf16> to vector<64x17xbf16>
    %c0_2 = arith.constant 0 : index
    %c0_3 = arith.constant 0 : index
    %2 = vector.load %arg2[%c0_2, %c0_3] : memref<17x512xbf16, #tpu.memory_space<vmem>>, vector<17x512xbf16>
    %cst = arith.constant dense<0.000000e+00> : vector<64x512xf32>
    %3 = tpu.matmul %1, %2, %cst {dimension_numbers = #tpu.dot_dimension_numbers<[1], [0], [0], [1], [0, 0, 1, 1], [], []>} : vector<64x17xbf16>, vector<17x512xbf16>, vector<64x512xf32> -> vector<64x512xf32>
    %c0_4 = arith.constant 0 : index
    %c0_5 = arith.constant 0 : index
    %4 = vector.load %arg7[%c0_4, %c0_5] : memref<64x512xf32, #tpu.memory_space<vmem>>, vector<64x512xf32>
    tpu.vector_store %arg7[%c0_4, %c0_5], %3 {strides = array<i32>} : memref<64x512xf32, #tpu.memory_space<vmem>>, vector<64x512xf32>,
    %cst_6 = arith.constant 0.000000e+00 : f32
    %5 = vector.broadcast %cst_6 : f32 to vector<8x128xf32>
    %cst_7 = arith.constant 0.000000e+00 : f32
    %6 = vector.broadcast %cst_7 : f32 to vector<8x128xf32>
    %c0_i32 = arith.constant 0 : i32
    %c8_i32 = arith.constant 8 : i32
    %7 = arith.muli %c0_i32, %c8_i32 : i32
    %8 = tpu.assume_multiple %7, 8 : i32
    %9 = arith.index_cast %8 : i32 to index
    %c0_8 = arith.constant 0 : index
    %10 = vector.load %arg7[%9, %c0_8] : memref<64x512xf32, #tpu.memory_space<vmem>>, vector<8x512xf32>
    %11 = arith.truncf %5 : vector<8x128xf32> to vector<8x128xbf16>
    %c0_9 = arith.constant 0 : index
    %c0_10 = arith.constant 0 : index
    %12 = vector.load %arg3[%c0_9, %c0_10] : memref<128x512xbf16, #tpu.memory_space<vmem>>, vector<128x512xbf16>
    %cst_11 = arith.constant dense<0.000000e+00> : vector<8x512xf32>
    %13 = tpu.matmul %11, %12, %cst_11 {dimension_numbers = #tpu.dot_dimension_numbers<[1], [0], [0], [1], [0, 0, 1, 1], [], []>} : vector<8x128xbf16>, vector<128x512xbf16>, vector<8x512xf32> -> vector<8x512xf32>
    %14 = arith.addf %10, %13 : vector<8x512xf32>
    %15 = vector.extract_strided_slice %14 {offsets = [0, 0], sizes = [8, 384], strides = [1, 1]} : vector<8x512xf32> to vector<8x384xf32>
    %16 = arith.negf %15 : vector<8x384xf32>
    %17 = math.exp %16 : vector<8x384xf32>
    %cst_12 = arith.constant 1.000000e+00 : f32
    %18 = vector.broadcast %cst_12 : f32 to vector<8x384xf32>
    %19 = arith.addf %18, %17 : vector<8x384xf32>
    %20 = arith.divf %18, %19 : vector<8x384xf32>
    %21 = vector.extract_strided_slice %20 {offsets = [0, 0], sizes = [8, 128], strides = [1, 1]} : vector<8x384xf32> to vector<8x128xf32>
    %22 = vector.extract_strided_slice %20 {offsets = [0, 128], sizes = [8, 128], strides = [1, 1]} : vector<8x384xf32> to vector<8x128xf32>
    %23 = vector.extract_strided_slice %20 {offsets = [0, 256], sizes = [8, 128], strides = [1, 1]} : vector<8x384xf32> to vector<8x128xf32>
    %24 = vector.extract_strided_slice %14 {offsets = [0, 384], sizes = [8, 128], strides = [1, 1]} : vector<8x512xf32> to vector<8x128xf32>
    %25 = math.tanh %24 : vector<8x128xf32>
    %26 = arith.mulf %22, %6 : vector<8x128xf32>
    %27 = arith.mulf %21, %25 : vector<8x128xf32>
    %28 = arith.addf %26, %27 : vector<8x128xf32>
    %29 = math.tanh %28 : vector<8x128xf32>
    %30 = arith.mulf %23, %29 : vector<8x128xf32>
    %c1_i32 = arith.constant 1 : i32
    %c8_i32_13 = arith.constant 8 : i32
    %31 = arith.muli %c1_i32, %c8_i32_13 : i32
    %32 = tpu.assume_multiple %31, 8 : i32
    %33 = arith.index_cast %32 : i32 to index
    %c0_14 = arith.constant 0 : index
    %34 = vector.load %arg7[%33, %c0_14] : memref<64x512xf32, #tpu.memory_space<vmem>>, vector<8x512xf32>
    %35 = arith.truncf %30 : vector<8x128xf32> to vector<8x128xbf16>
    %c0_15 = arith.constant 0 : index
    %c0_16 = arith.constant 0 : index
    %36 = vector.load %arg3[%c0_15, %c0_16] : memref<128x512xbf16, #tpu.memory_space<vmem>>, vector<128x512xbf16>
    %cst_17 = arith.constant dense<0.000000e+00> : vector<8x512xf32>
    %37 = tpu.matmul %35, %36, %cst_17 {dimension_numbers = #tpu.dot_dimension_numbers<[1], [0], [0], [1], [0, 0, 1, 1], [], []>} : vector<8x128xbf16>, vector<128x512xbf16>, vector<8x512xf32> -> vector<8x512xf32>
    %38 = arith.addf %34, %37 : vector<8x512xf32>
    %39 = vector.extract_strided_slice %38 {offsets = [0, 0], sizes = [8, 384], strides = [1, 1]} : vector<8x512xf32> to vector<8x384xf32>
    %40 = arith.negf %39 : vector<8x384xf32>
    %41 = math.exp %40 : vector<8x384xf32>
    %cst_18 = arith.constant 1.000000e+00 : f32
    %42 = vector.broadcast %cst_18 : f32 to vector<8x384xf32>
    %43 = arith.addf %42, %41 : vector<8x384xf32>
    %44 = arith.divf %42, %43 : vector<8x384xf32>
    %45 = vector.extract_strided_slice %44 {offsets = [0, 0], sizes = [8, 128], strides = [1, 1]} : vector<8x384xf32> to vector<8x128xf32>
    %46 = vector.extract_strided_slice %44 {offsets = [0, 128], sizes = [8, 128], strides = [1, 1]} : vector<8x384xf32> to vector<8x128xf32>
    %47 = vector.extract_strided_slice %44 {offsets = [0, 256], sizes = [8, 128], strides = [1, 1]} : vector<8x384xf32> to vector<8x128xf32>
    %48 = vector.extract_strided_slice %38 {offsets = [0, 384], sizes = [8, 128], strides = [1, 1]} : vector<8x512xf32> to vector<8x128xf32>
    %49 = math.tanh %48 : vector<8x128xf32>
    %50 = arith.mulf %46, %28 : vector<8x128xf32>
    %51 = arith.mulf %45, %49 : vector<8x128xf32>
    %52 = arith.addf %50, %51 : vector<8x128xf32>
    %53 = math.tanh %52 : vector<8x128xf32>
    %54 = arith.mulf %47, %53 : vector<8x128xf32>
    %c2_i32 = arith.constant 2 : i32
    %c8_i32_19 = arith.constant 8 : i32
    %55 = arith.muli %c2_i32, %c8_i32_19 : i32
    %56 = tpu.assume_multiple %55, 8 : i32
    %57 = arith.index_cast %56 : i32 to index
    %c0_20 = arith.constant 0 : index
    %58 = vector.load %arg7[%57, %c0_20] : memref<64x512xf32, #tpu.memory_space<vmem>>, vector<8x512xf32>
    %59 = arith.truncf %54 : vector<8x128xf32> to vector<8x128xbf16>
    %c0_21 = arith.constant 0 : index
    %c0_22 = arith.constant 0 : index
    %60 = vector.load %arg3[%c0_21, %c0_22] : memref<128x512xbf16, #tpu.memory_space<vmem>>, vector<128x512xbf16>
    %cst_23 = arith.constant dense<0.000000e+00> : vector<8x512xf32>
    %61 = tpu.matmul %59, %60, %cst_23 {dimension_numbers = #tpu.dot_dimension_numbers<[1], [0], [0], [1], [0, 0, 1, 1], [], []>} : vector<8x128xbf16>, vector<128x512xbf16>, vector<8x512xf32> -> vector<8x512xf32>
    %62 = arith.addf %58, %61 : vector<8x512xf32>
    %63 = vector.extract_strided_slice %62 {offsets = [0, 0], sizes = [8, 384], strides = [1, 1]} : vector<8x512xf32> to vector<8x384xf32>
    %64 = arith.negf %63 : vector<8x384xf32>
    %65 = math.exp %64 : vector<8x384xf32>
    %cst_24 = arith.constant 1.000000e+00 : f32
    %66 = vector.broadcast %cst_24 : f32 to vector<8x384xf32>
    %67 = arith.addf %66, %65 : vector<8x384xf32>
    %68 = arith.divf %66, %67 : vector<8x384xf32>
    %69 = vector.extract_strided_slice %68 {offsets = [0, 0], sizes = [8, 128], strides = [1, 1]} : vector<8x384xf32> to vector<8x128xf32>
    %70 = vector.extract_strided_slice %68 {offsets = [0, 128], sizes = [8, 128], strides = [1, 1]} : vector<8x384xf32> to vector<8x128xf32>
    %71 = vector.extract_strided_slice %68 {offsets = [0, 256], sizes = [8, 128], strides = [1, 1]} : vector<8x384xf32> to vector<8x128xf32>
    %72 = vector.extract_strided_slice %62 {offsets = [0, 384], sizes = [8, 128], strides = [1, 1]} : vector<8x512xf32> to vector<8x128xf32>
    %73 = math.tanh %72 : vector<8x128xf32>
    %74 = arith.mulf %70, %52 : vector<8x128xf32>
    %75 = arith.mulf %69, %73 : vector<8x128xf32>
    %76 = arith.addf %74, %75 : vector<8x128xf32>
    %77 = math.tanh %76 : vector<8x128xf32>
    %78 = arith.mulf %71, %77 : vector<8x128xf32>
    %c3_i32 = arith.constant 3 : i32
    %c8_i32_25 = arith.constant 8 : i32
    %79 = arith.muli %c3_i32, %c8_i32_25 : i32
    %80 = tpu.assume_multiple %79, 8 : i32
    %81 = arith.index_cast %80 : i32 to index
    %c0_26 = arith.constant 0 : index
    %82 = vector.load %arg7[%81, %c0_26] : memref<64x512xf32, #tpu.memory_space<vmem>>, vector<8x512xf32>
    %83 = arith.truncf %78 : vector<8x128xf32> to vector<8x128xbf16>
    %c0_27 = arith.constant 0 : index
    %c0_28 = arith.constant 0 : index
    %84 = vector.load %arg3[%c0_27, %c0_28] : memref<128x512xbf16, #tpu.memory_space<vmem>>, vector<128x512xbf16>
    %cst_29 = arith.constant dense<0.000000e+00> : vector<8x512xf32>
    %85 = tpu.matmul %83, %84, %cst_29 {dimension_numbers = #tpu.dot_dimension_numbers<[1], [0], [0], [1], [0, 0, 1, 1], [], []>} : vector<8x128xbf16>, vector<128x512xbf16>, vector<8x512xf32> -> vector<8x512xf32>
    %86 = arith.addf %82, %85 : vector<8x512xf32>
    %87 = vector.extract_strided_slice %86 {offsets = [0, 0], sizes = [8, 384], strides = [1, 1]} : vector<8x512xf32> to vector<8x384xf32>
    %88 = arith.negf %87 : vector<8x384xf32>
    %89 = math.exp %88 : vector<8x384xf32>
    %cst_30 = arith.constant 1.000000e+00 : f32
    %90 = vector.broadcast %cst_30 : f32 to vector<8x384xf32>
    %91 = arith.addf %90, %89 : vector<8x384xf32>
    %92 = arith.divf %90, %91 : vector<8x384xf32>
    %93 = vector.extract_strided_slice %92 {offsets = [0, 0], sizes = [8, 128], strides = [1, 1]} : vector<8x384xf32> to vector<8x128xf32>
    %94 = vector.extract_strided_slice %92 {offsets = [0, 128], sizes = [8, 128], strides = [1, 1]} : vector<8x384xf32> to vector<8x128xf32>
    %95 = vector.extract_strided_slice %92 {offsets = [0, 256], sizes = [8, 128], strides = [1, 1]} : vector<8x384xf32> to vector<8x128xf32>
    %96 = vector.extract_strided_slice %86 {offsets = [0, 384], sizes = [8, 128], strides = [1, 1]} : vector<8x512xf32> to vector<8x128xf32>
    %97 = math.tanh %96 : vector<8x128xf32>
    %98 = arith.mulf %94, %76 : vector<8x128xf32>
    %99 = arith.mulf %93, %97 : vector<8x128xf32>
    %100 = arith.addf %98, %99 : vector<8x128xf32>
    %101 = math.tanh %100 : vector<8x128xf32>
    %102 = arith.mulf %95, %101 : vector<8x128xf32>
    %c4_i32 = arith.constant 4 : i32
    %c8_i32_31 = arith.constant 8 : i32
    %103 = arith.muli %c4_i32, %c8_i32_31 : i32
    %104 = tpu.assume_multiple %103, 8 : i32
    %105 = arith.index_cast %104 : i32 to index
    %c0_32 = arith.constant 0 : index
    %106 = vector.load %arg7[%105, %c0_32] : memref<64x512xf32, #tpu.memory_space<vmem>>, vector<8x512xf32>
    %107 = arith.truncf %102 : vector<8x128xf32> to vector<8x128xbf16>
    %c0_33 = arith.constant 0 : index
    %c0_34 = arith.constant 0 : index
    %108 = vector.load %arg3[%c0_33, %c0_34] : memref<128x512xbf16, #tpu.memory_space<vmem>>, vector<128x512xbf16>
    %cst_35 = arith.constant dense<0.000000e+00> : vector<8x512xf32>
    %109 = tpu.matmul %107, %108, %cst_35 {dimension_numbers = #tpu.dot_dimension_numbers<[1], [0], [0], [1], [0, 0, 1, 1], [], []>} : vector<8x128xbf16>, vector<128x512xbf16>, vector<8x512xf32> -> vector<8x512xf32>
    %110 = arith.addf %106, %109 : vector<8x512xf32>
    %111 = vector.extract_strided_slice %110 {offsets = [0, 0], sizes = [8, 384], strides = [1, 1]} : vector<8x512xf32> to vector<8x384xf32>
    %112 = arith.negf %111 : vector<8x384xf32>
    %113 = math.exp %112 : vector<8x384xf32>
    %cst_36 = arith.constant 1.000000e+00 : f32
    %114 = vector.broadcast %cst_36 : f32 to vector<8x384xf32>
    %115 = arith.addf %114, %113 : vector<8x384xf32>
    %116 = arith.divf %114, %115 : vector<8x384xf32>
    %117 = vector.extract_strided_slice %116 {offsets = [0, 0], sizes = [8, 128], strides = [1, 1]} : vector<8x384xf32> to vector<8x128xf32>
    %118 = vector.extract_strided_slice %116 {offsets = [0, 128], sizes = [8, 128], strides = [1, 1]} : vector<8x384xf32> to vector<8x128xf32>
    %119 = vector.extract_strided_slice %116 {offsets = [0, 256], sizes = [8, 128], strides = [1, 1]} : vector<8x384xf32> to vector<8x128xf32>
    %120 = vector.extract_strided_slice %110 {offsets = [0, 384], sizes = [8, 128], strides = [1, 1]} : vector<8x512xf32> to vector<8x128xf32>
    %121 = math.tanh %120 : vector<8x128xf32>
    %122 = arith.mulf %118, %100 : vector<8x128xf32>
    %123 = arith.mulf %117, %121 : vector<8x128xf32>
    %124 = arith.addf %122, %123 : vector<8x128xf32>
    %125 = math.tanh %124 : vector<8x128xf32>
    %126 = arith.mulf %119, %125 : vector<8x128xf32>
    %c5_i32 = arith.constant 5 : i32
    %c8_i32_37 = arith.constant 8 : i32
    %127 = arith.muli %c5_i32, %c8_i32_37 : i32
    %128 = tpu.assume_multiple %127, 8 : i32
    %129 = arith.index_cast %128 : i32 to index
    %c0_38 = arith.constant 0 : index
    %130 = vector.load %arg7[%129, %c0_38] : memref<64x512xf32, #tpu.memory_space<vmem>>, vector<8x512xf32>
    %131 = arith.truncf %126 : vector<8x128xf32> to vector<8x128xbf16>
    %c0_39 = arith.constant 0 : index
    %c0_40 = arith.constant 0 : index
    %132 = vector.load %arg3[%c0_39, %c0_40] : memref<128x512xbf16, #tpu.memory_space<vmem>>, vector<128x512xbf16>
    %cst_41 = arith.constant dense<0.000000e+00> : vector<8x512xf32>
    %133 = tpu.matmul %131, %132, %cst_41 {dimension_numbers = #tpu.dot_dimension_numbers<[1], [0], [0], [1], [0, 0, 1, 1], [], []>} : vector<8x128xbf16>, vector<128x512xbf16>, vector<8x512xf32> -> vector<8x512xf32>
    %134 = arith.addf %130, %133 : vector<8x512xf32>
    %135 = vector.extract_strided_slice %134 {offsets = [0, 0], sizes = [8, 384], strides = [1, 1]} : vector<8x512xf32> to vector<8x384xf32>
    %136 = arith.negf %135 : vector<8x384xf32>
    %137 = math.exp %136 : vector<8x384xf32>
    %cst_42 = arith.constant 1.000000e+00 : f32
    %138 = vector.broadcast %cst_42 : f32 to vector<8x384xf32>
    %139 = arith.addf %138, %137 : vector<8x384xf32>
    %140 = arith.divf %138, %139 : vector<8x384xf32>
    %141 = vector.extract_strided_slice %140 {offsets = [0, 0], sizes = [8, 128], strides = [1, 1]} : vector<8x384xf32> to vector<8x128xf32>
    %142 = vector.extract_strided_slice %140 {offsets = [0, 128], sizes = [8, 128], strides = [1, 1]} : vector<8x384xf32> to vector<8x128xf32>
    %143 = vector.extract_strided_slice %140 {offsets = [0, 256], sizes = [8, 128], strides = [1, 1]} : vector<8x384xf32> to vector<8x128xf32>
    %144 = vector.extract_strided_slice %134 {offsets = [0, 384], sizes = [8, 128], strides = [1, 1]} : vector<8x512xf32> to vector<8x128xf32>
    %145 = math.tanh %144 : vector<8x128xf32>
    %146 = arith.mulf %142, %124 : vector<8x128xf32>
    %147 = arith.mulf %141, %145 : vector<8x128xf32>
    %148 = arith.addf %146, %147 : vector<8x128xf32>
    %149 = math.tanh %148 : vector<8x128xf32>
    %150 = arith.mulf %143, %149 : vector<8x128xf32>
    %c6_i32 = arith.constant 6 : i32
    %c8_i32_43 = arith.constant 8 : i32
    %151 = arith.muli %c6_i32, %c8_i32_43 : i32
    %152 = tpu.assume_multiple %151, 8 : i32
    %153 = arith.index_cast %152 : i32 to index
    %c0_44 = arith.constant 0 : index
    %154 = vector.load %arg7[%153, %c0_44] : memref<64x512xf32, #tpu.memory_space<vmem>>, vector<8x512xf32>
    %155 = arith.truncf %150 : vector<8x128xf32> to vector<8x128xbf16>
    %c0_45 = arith.constant 0 : index
    %c0_46 = arith.constant 0 : index
    %156 = vector.load %arg3[%c0_45, %c0_46] : memref<128x512xbf16, #tpu.memory_space<vmem>>, vector<128x512xbf16>
    %cst_47 = arith.constant dense<0.000000e+00> : vector<8x512xf32>
    %157 = tpu.matmul %155, %156, %cst_47 {dimension_numbers = #tpu.dot_dimension_numbers<[1], [0], [0], [1], [0, 0, 1, 1], [], []>} : vector<8x128xbf16>, vector<128x512xbf16>, vector<8x512xf32> -> vector<8x512xf32>
    %158 = arith.addf %154, %157 : vector<8x512xf32>
    %159 = vector.extract_strided_slice %158 {offsets = [0, 0], sizes = [8, 384], strides = [1, 1]} : vector<8x512xf32> to vector<8x384xf32>
    %160 = arith.negf %159 : vector<8x384xf32>
    %161 = math.exp %160 : vector<8x384xf32>
    %cst_48 = arith.constant 1.000000e+00 : f32
    %162 = vector.broadcast %cst_48 : f32 to vector<8x384xf32>
    %163 = arith.addf %162, %161 : vector<8x384xf32>
    %164 = arith.divf %162, %163 : vector<8x384xf32>
    %165 = vector.extract_strided_slice %164 {offsets = [0, 0], sizes = [8, 128], strides = [1, 1]} : vector<8x384xf32> to vector<8x128xf32>
    %166 = vector.extract_strided_slice %164 {offsets = [0, 128], sizes = [8, 128], strides = [1, 1]} : vector<8x384xf32> to vector<8x128xf32>
    %167 = vector.extract_strided_slice %164 {offsets = [0, 256], sizes = [8, 128], strides = [1, 1]} : vector<8x384xf32> to vector<8x128xf32>
    %168 = vector.extract_strided_slice %158 {offsets = [0, 384], sizes = [8, 128], strides = [1, 1]} : vector<8x512xf32> to vector<8x128xf32>
    %169 = math.tanh %168 : vector<8x128xf32>
    %170 = arith.mulf %166, %148 : vector<8x128xf32>
    %171 = arith.mulf %165, %169 : vector<8x128xf32>
    %172 = arith.addf %170, %171 : vector<8x128xf32>
    %173 = math.tanh %172 : vector<8x128xf32>
    %174 = arith.mulf %167, %173 : vector<8x128xf32>
    %c7_i32 = arith.constant 7 : i32
    %c8_i32_49 = arith.constant 8 : i32
    %175 = arith.muli %c7_i32, %c8_i32_49 : i32
    %176 = tpu.assume_multiple %175, 8 : i32
    %177 = arith.index_cast %176 : i32 to index
    %c0_50 = arith.constant 0 : index
    %178 = vector.load %arg7[%177, %c0_50] : memref<64x512xf32, #tpu.memory_space<vmem>>, vector<8x512xf32>
    %179 = arith.truncf %174 : vector<8x128xf32> to vector<8x128xbf16>
    %c0_51 = arith.constant 0 : index
    %c0_52 = arith.constant 0 : index
    %180 = vector.load %arg3[%c0_51, %c0_52] : memref<128x512xbf16, #tpu.memory_space<vmem>>, vector<128x512xbf16>
    %cst_53 = arith.constant dense<0.000000e+00> : vector<8x512xf32>
    %181 = tpu.matmul %179, %180, %cst_53 {dimension_numbers = #tpu.dot_dimension_numbers<[1], [0], [0], [1], [0, 0, 1, 1], [], []>} : vector<8x128xbf16>, vector<128x512xbf16>, vector<8x512xf32> -> vector<8x512xf32>
    %182 = arith.addf %178, %181 : vector<8x512xf32>
    %183 = vector.extract_strided_slice %182 {offsets = [0, 0], sizes = [8, 384], strides = [1, 1]} : vector<8x512xf32> to vector<8x384xf32>
    %184 = arith.negf %183 : vector<8x384xf32>
    %185 = math.exp %184 : vector<8x384xf32>
    %cst_54 = arith.constant 1.000000e+00 : f32
    %186 = vector.broadcast %cst_54 : f32 to vector<8x384xf32>
    %187 = arith.addf %186, %185 : vector<8x384xf32>
    %188 = arith.divf %186, %187 : vector<8x384xf32>
    %189 = vector.extract_strided_slice %188 {offsets = [0, 0], sizes = [8, 128], strides = [1, 1]} : vector<8x384xf32> to vector<8x128xf32>
    %190 = vector.extract_strided_slice %188 {offsets = [0, 128], sizes = [8, 128], strides = [1, 1]} : vector<8x384xf32> to vector<8x128xf32>
    %191 = vector.extract_strided_slice %188 {offsets = [0, 256], sizes = [8, 128], strides = [1, 1]} : vector<8x384xf32> to vector<8x128xf32>
    %192 = vector.extract_strided_slice %182 {offsets = [0, 384], sizes = [8, 128], strides = [1, 1]} : vector<8x512xf32> to vector<8x128xf32>
    %193 = math.tanh %192 : vector<8x128xf32>
    %194 = arith.mulf %190, %172 : vector<8x128xf32>
    %195 = arith.mulf %189, %193 : vector<8x128xf32>
    %196 = arith.addf %194, %195 : vector<8x128xf32>
    %197 = math.tanh %196 : vector<8x128xf32>
    %198 = arith.mulf %191, %197 : vector<8x128xf32>
    %c8_i32_55 = arith.constant 8 : i32
    %199 = arith.truncf %198 : vector<8x128xf32> to vector<8x128xbf16>
    %c0_56 = arith.constant 0 : index
    %c0_57 = arith.constant 0 : index
    %200 = vector.load %arg4[%c0_56, %c0_57] : memref<128x128xbf16, #tpu.memory_space<vmem>>, vector<128x128xbf16>
    %cst_58 = arith.constant dense<0.000000e+00> : vector<8x128xf32>
    %201 = tpu.matmul %199, %200, %cst_58 {dimension_numbers = #tpu.dot_dimension_numbers<[1], [0], [0], [1], [0, 0, 1, 1], [], []>} : vector<8x128xbf16>, vector<128x128xbf16>, vector<8x128xf32> -> vector<8x128xf32>
    %c0_59 = arith.constant 0 : index
    %c0_60 = arith.constant 0 : index
    %202 = vector.load %arg5[%c0_59, %c0_60] : memref<1x128xf32, #tpu.memory_space<vmem>>, vector<1x128xf32>
    %203 = vector.broadcast %202 : vector<1x128xf32> to vector<8x128xf32>
    %204 = arith.addf %201, %203 : vector<8x128xf32>
    %c0_61 = arith.constant 0 : index
    %c0_62 = arith.constant 0 : index
    %c0_63 = arith.constant 0 : index
    %205 = vector.load %arg6[%c0_61, %c0_62, %c0_63] : memref<1x8x128xf32, #tpu.memory_space<vmem>>, vector<1x8x128xf32>
    %206 = vector.shape_cast %205 : vector<1x8x128xf32> to vector<8x128xf32>
    %207 = vector.shape_cast %204 : vector<8x128xf32> to vector<1x8x128xf32>
    tpu.vector_store %arg6[%c0_61, %c0_62, %c0_63], %207 {strides = array<i32>} : memref<1x8x128xf32, #tpu.memory_space<vmem>>, vector<1x8x128xf32>,
    return
  }
  func.func @transform_0(%arg0: i32) -> (i32, i32, i32) {
    %c0_i32 = arith.constant 0 : i32
    %c0_i32_0 = arith.constant 0 : i32
    %c0_i32_1 = arith.constant 0 : i32
    return %arg0, %c0_i32, %c0_i32_0 : i32, i32, i32
  }
  func.func @transform_1(%arg0: i32) -> (i32, i32) {
    %c0_i32 = arith.constant 0 : i32
    %c0_i32_0 = arith.constant 0 : i32
    %c0_i32_1 = arith.constant 0 : i32
    return %c0_i32, %c0_i32_0 : i32, i32
  }
  func.func @transform_2(%arg0: i32) -> (i32, i32) {
    %c0_i32 = arith.constant 0 : i32
    %c0_i32_0 = arith.constant 0 : i32
    %c0_i32_1 = arith.constant 0 : i32
    return %c0_i32, %c0_i32_0 : i32, i32
  }
  func.func @transform_3(%arg0: i32) -> (i32, i32) {
    %c0_i32 = arith.constant 0 : i32
    %c0_i32_0 = arith.constant 0 : i32
    %c0_i32_1 = arith.constant 0 : i32
    return %c0_i32, %c0_i32_0 : i32, i32
  }
  func.func @transform_4(%arg0: i32) -> (i32, i32) {
    %c0_i32 = arith.constant 0 : i32
    %c0_i32_0 = arith.constant 0 : i32
    %c0_i32_1 = arith.constant 0 : i32
    return %c0_i32, %c0_i32_0 : i32, i32
  }
  func.func @transform_5(%arg0: i32) -> (i32, i32, i32) {
    %c0_i32 = arith.constant 0 : i32
    %c0_i32_0 = arith.constant 0 : i32
    %c0_i32_1 = arith.constant 0 : i32
    return %arg0, %c0_i32, %c0_i32_0 : i32, i32, i32
  }
}

</mosaic_0001>

<bundles_post_ra>
// kernel: wide_lstm_net_forward.1
= control target key start
LH: loop header
LB: loop body
LE: loop exit
PB: predicated region body
PF: predicated region fallthrough
CT: control target
= control target key end

     0   :  { %vm98_vm0 = vcmask 1040384   ;;  %v1974_v6 = vmov 0   ;;  %vm85_vm1 = vcmask 138240   ;;  %s2740_s1 = inlined_call_operand.vmem [shape: bf16[17,512], index: 1, kind: input, shape index: {}]   ;;  %s2741_s2 = inlined_call_operand.vmem [shape: bf16[128,512], index: 2, kind: input, shape index: {}]   ;;  %s2742_s0 = inlined_call_operand.vmem [shape: bf16[1,64,17], index: 0, kind: input, shape index: {}]   ;;  %s2743_s4 = inlined_call_operand.vmem [shape: f32[1,128], index: 4, kind: input, shape index: {}]   ;;  %s2744_s3 = inlined_call_operand.vmem [shape: bf16[128,128], index: 3, kind: input, shape index: {}]   ;;  %s2745_s5 = inlined_call_operand.vmem [shape: f32[1,8,128], index: 5, kind: output, shape index: {}]  }
   0x1   :  { %v33_v0 = vld [vmem:[%s2740_s1 + $0x20] sm:$0x11]  ;;  %v34_v1 = vld [vmem:[%s2740_s1 + $0x28] sm:$0x11]  ;;  %v100_v7 = vsel %vm98_vm0, 65535, %v1974_v6  ;;  %v2044_v27 = vld [vmem:[%s2742_s0 + $0x18] sm:$0xff] }
   0x2   :  { %v69_v2 = vunpack.c.l.b16 %v33_v0  ;;  %v71_v3 = vunpack.c.l.b16 %v34_v1  ;;  %v72_v4 = vunpack.c.h.b16 %v34_v1  ;;  %v70_v5 = vunpack.c.h.b16 %v33_v0  ;;  %v1580_v11 = vld [vmem:[%s2740_s1] sm:$0xf]  ;;  %v1800_v12 = vld [vmem:[%s2740_s1 + $0xc] sm:$0xf0]  ;;  %v1588_v13 = vld [vmem:[%s2740_s1 + $0x8] sm:$0xf] }
   0x3   :  { %v1801_v17 = vld [vmem:[%s2740_s1 + $0x14] sm:$0xf0]  ;;  %v1799_v18 = vld [vmem:[%s2740_s1 + $0xc] sm:$0xf]  ;;  %v1590_v19 = vld [vmem:[%s2740_s1 + $0x18] sm:$0xf0]  ;;  %v1581_v23 = vor.u32 %v1800_v12, %v1580_v11 }
   0x4   :  { %v77_v8 = vpack.c.b16 %v69_v2, %v69_v2  ;;  %v79_v9 = vpack.c.b16 %v71_v3, %v71_v3  ;;  %v80_v10 = vpack.c.b16 %v72_v4, %v72_v4  ;;  %v78_v20 = vpack.c.b16 %v70_v5, %v70_v5  ;;  %v1724_v21 = vld [vmem:[%s2741_s2 + $0xe0] sm:$0xf]  ;;  %v1832_v22 = vld [vmem:[%s2741_s2 + $0xec] sm:$0xf0]  ;;  %v1798_v28 = vld [vmem:[%s2740_s1 + $0x4] sm:$0xf] }
   0x5   :  { %v1589_v24 = vor.u32 %v1801_v17, %v1588_v13  ;;  %v1593_v25 = vor.u32 %v1799_v18, %v1590_v19  ;;  %v2039_v26 = vld [vmem:[%s2742_s0] sm:$0xff]  ;;  %v1582_v29 = vld [vmem:[%s2740_s1 + $0x10] sm:$0xf0]  ;;  %v2052_v31 = vor.u32 %v1832_v22, %v1724_v21  ;;  %v1732_v32 = vld [vmem:[%s2741_s2 + $0xe8] sm:$0xf] }
   0x6   :  { %v102_v14 = vand.u32 %v100_v7, %v77_v8  ;;  %v108_v15 = vand.u32 %v100_v7, %v79_v9  ;;  %v111_v16 = vand.u32 %v100_v7, %v80_v10  ;;  %v105_v30 = vand.u32 %v100_v7, %v78_v20  ;;  %v1833_v33 = vld [vmem:[%s2741_s2 + $0xf4] sm:$0xf0]  ;;  %v1831_v34 = vld [vmem:[%s2741_s2 + $0xec] sm:$0xf]  ;;  %v1708_v35 = vld [vmem:[%s2741_s2 + $0xc0] sm:$0xf] }
   0x7   :  { %v1828_v36 = vld [vmem:[%s2741_s2 + $0xcc] sm:$0xf0]  ;;  %v1734_v37 = vld [vmem:[%s2741_s2 + $0xf8] sm:$0xf0]  ;;  %v1830_v38 = vld [vmem:[%s2741_s2 + $0xe4] sm:$0xf]  ;;  %v2078_v40 = vor.u32 %v1833_v33, %v1732_v32  ;;  %v1585_v42 = vor.u32 %v1798_v28, %v1582_v29 }
   0x8   :  { %119 = vmatpush.bf16.msra.mxu0 %v102_v14  ;;  %1842 = vmatpush.bf16.msra.mxu1 %v102_v14  ;;  %v1726_v39 = vld [vmem:[%s2741_s2 + $0xf0] sm:$0xf0]  ;;  %v2080_v41 = vor.u32 %v1831_v34, %v1734_v37  ;;  %v2083_v43 = vor.u32 %v1828_v36, %v1708_v35  ;;  %v1716_v44 = vld [vmem:[%s2741_s2 + $0xc8] sm:$0xf]  ;;  %v1829_v45 = vld [vmem:[%s2741_s2 + $0xd4] sm:$0xf0] }
   0x9   :  { %177 = vmatpush.bf16.msra.mxu2 %v108_v15  ;;  %206 = vmatpush.bf16.msra.mxu3 %v111_v16  ;;  %v2095_v46 = vor.u32 %v1830_v38, %v1726_v39  ;;  %v1692_v47 = vld [vmem:[%s2741_s2 + $0xa0] sm:$0xf]  ;;  %v1824_v48 = vld [vmem:[%s2741_s2 + $0xac] sm:$0xf0]  ;;  %v1826_v49 = vld [vmem:[%s2741_s2 + $0xc4] sm:$0xf]  ;;  %v2114_v51 = vor.u32 %v1829_v45, %v1716_v44 }
   0xa   :  { %v1710_v50 = vld [vmem:[%s2741_s2 + $0xd0] sm:$0xf0]  ;;  %v1700_v52 = vld [vmem:[%s2741_s2 + $0xa8] sm:$0xf]  ;;  %v2121_v53 = vor.u32 %v1824_v48, %v1692_v47  ;;  %v1825_v54 = vld [vmem:[%s2741_s2 + $0xb4] sm:$0xf0] }
   0xb   :  { %v1827_v55 = vld [vmem:[%s2741_s2 + $0xcc] sm:$0xf]  ;;  %v1718_v56 = vld [vmem:[%s2741_s2 + $0xd8] sm:$0xf0]  ;;  %v2133_v57 = vor.u32 %v1826_v49, %v1710_v50  ;;  %v1676_v58 = vld [vmem:[%s2741_s2 + $0x80] sm:$0xf]  ;;  %v2156_v1 = vor.u32 %v1825_v54, %v1700_v52 }
   0xc   :  { %120 = vmatpush.bf16.msra.mxu0 %v1581_v23  ;;  %1843 = vmatpush.bf16.msra.mxu1 %v1581_v23  ;;  %v1820_v59 = vld [vmem:[%s2741_s2 + $0x8c] sm:$0xf0]  ;;  %v1822_v60 = vld [vmem:[%s2741_s2 + $0xa4] sm:$0xf]  ;;  %v2144_v61 = vor.u32 %v1827_v55, %v1718_v56  ;;  %v1694_v62 = vld [vmem:[%s2741_s2 + $0xb0] sm:$0xf0] }
   0xd   :  { %178 = vmatpush.bf16.msra.mxu2 %v1589_v24  ;;  %207 = vmatpush.bf16.msra.mxu3 %v1593_v25  ;;  %v1823_v63 = vld [vmem:[%s2741_s2 + $0xac] sm:$0xf]  ;;  %v1702_v0 = vld [vmem:[%s2741_s2 + $0xb8] sm:$0xf0]  ;;  %v1684_v3 = vld [vmem:[%s2741_s2 + $0x88] sm:$0xf]  ;;  %v2165_v4 = vor.u32 %v1820_v59, %v1676_v58  ;;  %v2177_v9 = vor.u32 %v1822_v60, %v1694_v62 }
   0xe   :  { %v2159_v2 = vor.u32 %v1823_v63, %v1702_v0  ;;  %v1821_v5 = vld [vmem:[%s2741_s2 + $0x94] sm:$0xf0]  ;;  %v1819_v7 = vld [vmem:[%s2741_s2 + $0x8c] sm:$0xf]  ;;  %v1686_v8 = vld [vmem:[%s2741_s2 + $0x98] sm:$0xf0] }
   0xf   :  { %1594 = vmatmul.msk.bf16.vlgmr.msra.gmra.mxu0 %vm85_vm1, %v2039_v26  ;;  %1597 = vmatmul.msk.bf16.vlgmr.msra.gmra.mxu1 %vm85_vm1, %v2044_v27  ;;  %v1660_v10 = vld [vmem:[%s2741_s2 + $0x60] sm:$0xf]  ;;  %v1816_v11 = vld [vmem:[%s2741_s2 + $0x6c] sm:$0xf0]  ;;  %v2187_v12 = vor.u32 %v1821_v5, %v1684_v3  ;;  %v2189_v13 = vor.u32 %v1819_v7, %v1686_v8  ;;  %v1818_v15 = vld [vmem:[%s2741_s2 + $0x84] sm:$0xf] }
  0x10   :  { %148 = vmatpush.bf16.msrb.mxu1 %v105_v30  ;;  %460 = vmatpush.bf16.msrb.mxu0 %v2052_v31  ;;  %v2192_v14 = vor.u32 %v1816_v11, %v1660_v10  ;;  %v1678_v16 = vld [vmem:[%s2741_s2 + $0x90] sm:$0xf0]  ;;  %v2203_v17 = vld [vmem:[%s2742_s0 + $0x8] sm:$0xff]  ;;  %v1644_v18 = vld [vmem:[%s2741_s2 + $0x40] sm:$0xf] }
  0x11   :  { %1602 = vmatmul.msk.bf16.vlgmr.msra.gmra.mxu2 %vm85_vm1, %v2039_v26  ;;  %1606 = vmatmul.msk.bf16.vlgmr.msra.gmra.mxu3 %vm85_vm1, %v2039_v26  ;;  %v1812_v19 = vld [vmem:[%s2741_s2 + $0x4c] sm:$0xf0]  ;;  %v2212_v20 = vor.u32 %v1818_v15, %v1678_v16  ;;  %v1668_v22 = vld [vmem:[%s2741_s2 + $0x68] sm:$0xf]  ;;  %v1817_v23 = vld [vmem:[%s2741_s2 + $0x74] sm:$0xf0] }
  0x12   :  { %486 = vmatpush.bf16.msrb.mxu2 %v2078_v40  ;;  %499 = vmatpush.bf16.msrb.mxu3 %v2080_v41  ;;  %v2217_v21 = vor.u32 %v1812_v19, %v1644_v18  ;;  %v1815_v24 = vld [vmem:[%s2741_s2 + $0x6c] sm:$0xf]  ;;  %v1628_v25 = vld [vmem:[%s2741_s2 + $0x20] sm:$0xf]  ;;  %v1808_v28 = vld [vmem:[%s2741_s2 + $0x2c] sm:$0xf0]  ;;  %v2238_v29 = vor.u32 %v1817_v23, %v1668_v22 }
  0x13   :  { %v1670_v30 = vld [vmem:[%s2741_s2 + $0x78] sm:$0xf0]  ;;  %v1662_v32 = vld [vmem:[%s2741_s2 + $0x70] sm:$0xf0]  ;;  %v1652_v34 = vld [vmem:[%s2741_s2 + $0x48] sm:$0xf]  ;;  %v2278_v44 = vor.u32 %v1808_v28, %v1628_v25 }
  0x14   :  { %149 = vmatpush.bf16.msrb.mxu1 %v1585_v42  ;;  %461 = vmatpush.bf16.msrb.mxu0 %v2083_v43  ;;  %v2253_v33 = vor.u32 %v1815_v24, %v1670_v30  ;;  %v1612_v35 = vld [vmem:[%s2741_s2] sm:$0xf]  ;;  %v1804_v36 = vld [vmem:[%s2741_s2 + $0xc] sm:$0xf0]  ;;  %v1813_v38 = vld [vmem:[%s2741_s2 + $0x54] sm:$0xf0] }
  0x15   :  { %v1811_v39 = vld [vmem:[%s2741_s2 + $0x4c] sm:$0xf]  ;;  %v1654_v42 = vld [vmem:[%s2741_s2 + $0x58] sm:$0xf0]  ;;  %v2281_v45 = vor.u32 %v1813_v38, %v1652_v34  ;;  %v1810_v48 = vld [vmem:[%s2741_s2 + $0x44] sm:$0xf]  ;;  %v2310_v59 = vor.u32 %v1804_v36, %v1612_v35 }
  0x16   :  { %487 = vmatpush.bf16.msrb.mxu2 %v2114_v51  ;;  %500 = vmatpush.bf16.msrb.mxu3 %v2144_v61  ;;  %v2283_v47 = vor.u32 %v1811_v39, %v1654_v42  ;;  %v1646_v49 = vld [vmem:[%s2741_s2 + $0x50] sm:$0xf0]  ;;  %v1636_v50 = vld [vmem:[%s2741_s2 + $0x28] sm:$0xf]  ;;  %v1809_v52 = vld [vmem:[%s2741_s2 + $0x34] sm:$0xf0] }
  0x17   :  { %v1807_v54 = vld [vmem:[%s2741_s2 + $0x2c] sm:$0xf]  ;;  %v1638_v55 = vld [vmem:[%s2741_s2 + $0x38] sm:$0xf0]  ;;  %v2305_v56 = vor.u32 %v1810_v48, %v1646_v49  ;;  %v2307_v58 = vor.u32 %v1809_v52, %v1636_v50  ;;  %v1620_v62 = vld [vmem:[%s2741_s2 + $0x8] sm:$0xf] }
  0x18   :  { %473 = vmatpush.bf16.msra.mxu1 %v2095_v46  ;;  %462 = vmatpush.bf16.msrb.mxu0 %v2121_v53  ;;  %v2313_v60 = vor.u32 %v1807_v54, %v1638_v55  ;;  %v1805_v63 = vld [vmem:[%s2741_s2 + $0x14] sm:$0xf0]  ;;  %v1803_v0 = vld [vmem:[%s2741_s2 + $0xc] sm:$0xf]  ;;  %v1622_v3 = vld [vmem:[%s2741_s2 + $0x18] sm:$0xf0] }
  0x19   :  { %v2329_v5 = vor.u32 %v1805_v63, %v1620_v62  ;;  %v2333_v7 = vor.u32 %v1803_v0, %v1622_v3  ;;  %v1796_v8 = vld [vmem:[%s2742_s0 + $0x10] sm:$0xff]  ;;  %v1806_v10 = vld [vmem:[%s2741_s2 + $0x24] sm:$0xf] }
  0x1a   :  { %488 = vmatpush.bf16.msrb.mxu2 %v2156_v1  ;;  %501 = vmatpush.bf16.msrb.mxu3 %v2159_v2  ;;  %v1630_v11 = vld [vmem:[%s2741_s2 + $0x30] sm:$0xf0]  ;;  %v1802_v16 = vld [vmem:[%s2741_s2 + $0x4] sm:$0xf] }
  0x1b   :  { %v2353_v15 = vor.u32 %v1806_v10, %v1630_v11 }
  0x1c   :  { %474 = vmatpush.bf16.msra.mxu1 %v2133_v57  ;;  %463 = vmatpush.bf16.msrb.mxu0 %v2165_v4 }
  0x1e   :  { %489 = vmatpush.bf16.msrb.mxu2 %v2187_v12  ;;  %502 = vmatpush.bf16.msrb.mxu3 %v2189_v13 }
  0x1f   :  { %1595 = vmatmul.msk.bf16.gmra.mxu0 %vm85_vm1, %v2203_v17  ;;  %1598 = vmatmul.msk.bf16.vlgmr.msrb.gmra.mxu1 %vm85_vm1, %v2039_v26  ;;  %v1814_v26 = vld [vmem:[%s2741_s2 + $0x64] sm:$0xf] }
  0x20   :  { %475 = vmatpush.bf16.msra.mxu1 %v2177_v9  ;;  %464 = vmatpush.bf16.msrb.mxu0 %v2192_v14  ;;  %v2265_v37 = vor.u32 %v1814_v26, %v1662_v32 }
  0x21   :  { %1603 = vmatmul.msk.bf16.gmra.mxu2 %vm85_vm1, %v2203_v17  ;;  %1607 = vmatmul.msk.bf16.gmra.mxu3 %vm85_vm1, %v2203_v17 }
  0x22   :  { %490 = vmatpush.bf16.msrb.mxu2 %v2238_v29  ;;  %503 = vmatpush.bf16.msrb.mxu3 %v2253_v33 }
  0x24   :  { %476 = vmatpush.bf16.msra.mxu1 %v2212_v20  ;;  %465 = vmatpush.bf16.msrb.mxu0 %v2217_v21 }
  0x26   :  { %491 = vmatpush.bf16.msrb.mxu2 %v2281_v45  ;;  %504 = vmatpush.bf16.msrb.mxu3 %v2283_v47 }
  0x28   :  { %477 = vmatpush.bf16.msra.mxu1 %v2265_v37  ;;  %466 = vmatpush.bf16.msrb.mxu0 %v2278_v44 }
  0x2a   :  { %492 = vmatpush.bf16.msrb.mxu2 %v2307_v58  ;;  %505 = vmatpush.bf16.msrb.mxu3 %v2313_v60 }
  0x2c   :  { %478 = vmatpush.bf16.msra.mxu1 %v2305_v56  ;;  %467 = vmatpush.bf16.msrb.mxu0 %v2310_v59 }
  0x2e   :  { %493 = vmatpush.bf16.msrb.mxu2 %v2329_v5  ;;  %506 = vmatpush.bf16.msrb.mxu3 %v2333_v7 }
  0x2f   :  { %1596 = vmatmul.msk.bf16.gmra.mxu0 %vm85_vm1, %v1796_v8  ;;  %1599 = vmatmul.msk.bf16.gmra.mxu1 %vm85_vm1, %v2203_v17  ;;  %v1614_v17 = vld [vmem:[%s2741_s2 + $0x10] sm:$0xf0] }
  0x30   :  { %587 = vmatpush.bf16.msra.mxu0 %v2052_v31  ;;  %479 = vmatpush.bf16.msra.mxu1 %v2353_v15  ;;  %v2364_v18 = vor.u32 %v1802_v16, %v1614_v17 }
  0x31   :  { %1604 = vmatmul.msk.bf16.gmra.mxu2 %vm85_vm1, %v1796_v8  ;;  %1608 = vmatmul.msk.bf16.gmra.mxu3 %vm85_vm1, %v1796_v8 }
  0x32   :  { %613 = vmatpush.bf16.msra.mxu2 %v2078_v40  ;;  %626 = vmatpush.bf16.msra.mxu3 %v2080_v41 }
  0x34   :  { %588 = vmatpush.bf16.msra.mxu0 %v2083_v43  ;;  %480 = vmatpush.bf16.msra.mxu1 %v2364_v18 }
  0x36   :  { %614 = vmatpush.bf16.msra.mxu2 %v2114_v51  ;;  %627 = vmatpush.bf16.msra.mxu3 %v2144_v61 }
  0x38   :  { %589 = vmatpush.bf16.msra.mxu0 %v2121_v53  ;;  %600 = vmatpush.bf16.msrb.mxu1 %v2095_v46 }
  0x3a   :  { %615 = vmatpush.bf16.msra.mxu2 %v2156_v1  ;;  %628 = vmatpush.bf16.msra.mxu3 %v2159_v2 }
  0x3c   :  { %590 = vmatpush.bf16.msra.mxu0 %v2165_v4  ;;  %601 = vmatpush.bf16.msrb.mxu1 %v2133_v57 }
  0x3e   :  { %616 = vmatpush.bf16.msra.mxu2 %v2187_v12  ;;  %629 = vmatpush.bf16.msra.mxu3 %v2189_v13 }
  0x3f   :  { %1600 = vmatmul.msk.bf16.gmra.mxu1 %vm85_vm1, %v1796_v8  ;;  %468 = vmatmul.bf16.vlgmr.msrb.gmra.mxu0 %v1974_v6 }
  0x40   :  { %591 = vmatpush.bf16.msra.mxu0 %v2192_v14  ;;  %602 = vmatpush.bf16.msrb.mxu1 %v2177_v9 }
  0x41   :  { %1605 = vmatmul.msk.bf16.gmra.mxu2 %vm85_vm1, %v2044_v27  ;;  %1609 = vmatmul.msk.bf16.gmra.mxu3 %vm85_vm1, %v2044_v27 }
  0x42   :  { %617 = vmatpush.bf16.msra.mxu2 %v2238_v29  ;;  %630 = vmatpush.bf16.msra.mxu3 %v2253_v33 }
  0x44   :  { %592 = vmatpush.bf16.msra.mxu0 %v2217_v21  ;;  %603 = vmatpush.bf16.msrb.mxu1 %v2212_v20 }
  0x46   :  { %618 = vmatpush.bf16.msra.mxu2 %v2281_v45  ;;  %631 = vmatpush.bf16.msra.mxu3 %v2283_v47 }
  0x48   :  { %593 = vmatpush.bf16.msra.mxu0 %v2278_v44  ;;  %604 = vmatpush.bf16.msrb.mxu1 %v2265_v37 }
  0x4a   :  { %619 = vmatpush.bf16.msra.mxu2 %v2307_v58  ;;  %632 = vmatpush.bf16.msra.mxu3 %v2313_v60 }
  0x4c   :  { %594 = vmatpush.bf16.msra.mxu0 %v2310_v59  ;;  %605 = vmatpush.bf16.msrb.mxu1 %v2305_v56 }
  0x4e   :  { %620 = vmatpush.bf16.msra.mxu2 %v2329_v5  ;;  %633 = vmatpush.bf16.msra.mxu3 %v2333_v7 }
  0x4f   :  { %1601 = vmatmul.msk.bf16.gmra.mxu1 %vm85_vm1, %v2044_v27 }
  0x50   :  { %714 = vmatpush.bf16.msrb.mxu0 %v2052_v31  ;;  %606 = vmatpush.bf16.msrb.mxu1 %v2353_v15 }
  0x51   :  { %494 = vmatmul.bf16.vlgmr.msrb.gmra.mxu2 %v1974_v6  ;;  %507 = vmatmul.bf16.vlgmr.msrb.gmra.mxu3 %v1974_v6 }
  0x52   :  { %740 = vmatpush.bf16.msrb.mxu2 %v2078_v40  ;;  %753 = vmatpush.bf16.msrb.mxu3 %v2080_v41 }
  0x54   :  { %715 = vmatpush.bf16.msrb.mxu0 %v2083_v43  ;;  %607 = vmatpush.bf16.msrb.mxu1 %v2364_v18 }
  0x56   :  { %741 = vmatpush.bf16.msrb.mxu2 %v2114_v51  ;;  %754 = vmatpush.bf16.msrb.mxu3 %v2144_v61 }
  0x58   :  { %716 = vmatpush.bf16.msrb.mxu0 %v2121_v53 }
  0x5a   :  { %742 = vmatpush.bf16.msrb.mxu2 %v2156_v1  ;;  %755 = vmatpush.bf16.msrb.mxu3 %v2159_v2 }
  0x5c   :  { %717 = vmatpush.bf16.msrb.mxu0 %v2165_v4 }
  0x5e   :  { %743 = vmatpush.bf16.msrb.mxu2 %v2187_v12  ;;  %756 = vmatpush.bf16.msrb.mxu3 %v2189_v13 }
  0x5f   :  { %481 = vmatmul.bf16.vlgmr.msra.gmra.mxu1 %v1974_v6 }
  0x60   :  { %718 = vmatpush.bf16.msrb.mxu0 %v2192_v14  ;;  %727 = vmatpush.bf16.msra.mxu1 %v2095_v46 }
  0x62   :  { %744 = vmatpush.bf16.msrb.mxu2 %v2238_v29  ;;  %757 = vmatpush.bf16.msrb.mxu3 %v2253_v33 }
  0x64   :  { %719 = vmatpush.bf16.msrb.mxu0 %v2217_v21  ;;  %728 = vmatpush.bf16.msra.mxu1 %v2133_v57 }
  0x66   :  { %745 = vmatpush.bf16.msrb.mxu2 %v2281_v45  ;;  %758 = vmatpush.bf16.msrb.mxu3 %v2283_v47 }
  0x68   :  { %720 = vmatpush.bf16.msrb.mxu0 %v2278_v44  ;;  %729 = vmatpush.bf16.msra.mxu1 %v2177_v9 }
  0x6a   :  { %746 = vmatpush.bf16.msrb.mxu2 %v2307_v58  ;;  %759 = vmatpush.bf16.msrb.mxu3 %v2313_v60 }
  0x6c   :  { %721 = vmatpush.bf16.msrb.mxu0 %v2310_v59  ;;  %730 = vmatpush.bf16.msra.mxu1 %v2212_v20 }
  0x6e   :  { %747 = vmatpush.bf16.msrb.mxu2 %v2329_v5  ;;  %760 = vmatpush.bf16.msrb.mxu3 %v2333_v7 }
  0x70   :  { %731 = vmatpush.bf16.msra.mxu1 %v2265_v37 }
  0x74   :  { %732 = vmatpush.bf16.msra.mxu1 %v2305_v56 }
  0x78   :  { %733 = vmatpush.bf16.msra.mxu1 %v2353_v15 }
  0x7c   :  { %734 = vmatpush.bf16.msra.mxu1 %v2364_v18 }
  0x8c   :  { %v122_v6 = vpop.f32.mrf.mxu0  ;;  %v2438_v27 = vpop.f32.mrf.mxu1 }
  0x8d   :  { %2746 = vst [vmem:[#allocation3_spill] sm:$0xff] %v2438_v27 }
  0x94   :  { %v180_v19 = vpop.f32.mrf.mxu2  ;;  %v209_v22 = vpop.f32.mrf.mxu3 }
  0x95   :  { %v2440_v23 = vpop.f32.mrf.mxu0  ;;  %v2442_v24 = vpop.f32.mrf.mxu1 }
  0x96   :  { %2747 = vst [vmem:[#allocation4_spill] sm:$0xff] %v2442_v24 }
  0x9c   :  { %v2444_v25 = vpop.f32.mrf.mxu2  ;;  %v2446_v28 = vpop.f32.mrf.mxu3 }
  0x9d   :  { %v2448_v30 = vpop.f32.mrf.mxu0  ;;  %v151_v26 = vpop.f32.mrf.mxu1 }
  0xa4   :  { %v2450_v32 = vpop.f32.mrf.mxu2  ;;  %v2452_v34 = vpop.f32.mrf.mxu3 }
  0xa5   :  { %v2454_v35 = vpop.f32.mrf.mxu0  ;;  %v2456_v36 = vpop.f32.mrf.mxu1 }
  0xac   :  { %v2458_v38 = vpop.f32.mrf.mxu2  ;;  %v2460_v39 = vpop.f32.mrf.mxu3 }
  0xad   :  { %2748 = vst [vmem:[#allocation5_spill] sm:$0xff] %v2458_v38  ;;  %v2462_v42 = vpop.f32.mrf.mxu0  ;;  %v2464_v48 = vpop.f32.mrf.mxu1 }
  0xae   :  { %2749 = vst [vmem:[#allocation6_spill] sm:$0xff] %v2460_v39 }
  0xaf   :  { %2750 = vst [vmem:[#allocation7_spill] sm:$0xff] %v2462_v42 }
  0xb4   :  { %v2466_v49 = vpop.f32.mrf.mxu2  ;;  %v2468_v50 = vpop.f32.mrf.mxu3 }
  0xb5   :  { %2751 = vst [vmem:[#allocation8_spill] sm:$0xff] %v2466_v49  ;;  %v2470_v52 = vpop.f32.mrf.mxu0  ;;  %v2472_v54 = vpop.f32.mrf.mxu1 }
  0xb6   :  { %2752 = vst [vmem:[#allocation9_spill] sm:$0xff] %v2468_v50 }
  0xb7   :  { %2753 = vst [vmem:[#allocation10_spill] sm:$0xff] %v2470_v52 }
  0xbc   :  { %v2474_v55 = vpop.f32.mrf.mxu2  ;;  %v2476_v62 = vpop.f32.mrf.mxu3 }
  0xbd   :  { %2754 = vst [vmem:[#allocation11_spill] sm:$0xff] %v2474_v55  ;;  %v2478_v63 = vpop.f32.mrf.mxu1  ;;  %v469_v0 = vpop.f32.mrf.mxu0 }
  0xbe   :  { %2755 = vst [vmem:[#allocation12_spill] sm:$0xff] %v2476_v62  ;;  %v512_v3 = vadd.f32 %v469_v0, %v122_v6 }
  0xbf   :  { %2756 = vst [vmem:[#allocation13_spill] sm:$0xff] %v2478_v63 }
  0xc0   :  { %v1738_v8 = vmul.f32 -1.442695, %v512_v3 }
  0xc2   :  { %1846 = vpow2.f32 %v1738_v8 }
  0xc4   :  { %v2480_v10 = vpop.f32.mrf.mxu2  ;;  %v2482_v11 = vpop.f32.mrf.mxu3 }
  0xc5   :  { %2757 = vst [vmem:[#allocation14_spill] sm:$0xff] %v2480_v10  ;;  %v2484_v16 = vpop.f32.mrf.mxu1  ;;  %v471_v17 = vpop.f32.mrf.mxu0 }
  0xc6   :  { %2758 = vst [vmem:[#allocation15_spill] sm:$0xff] %v2482_v11 }
  0xc7   :  { %2759 = vst [vmem:[#allocation16_spill] sm:$0xff] %v2484_v16 }
  0xc8   :  { %v1847_v24 = vpop.eup %1846 }
  0xc9   :  { %v525_v27 = vadd.f32 1.0, %v1847_v24 }
  0xcb   :  { %1848 = vrcp.f32 %v525_v27  ;;  %v539_v49 = vand.u32 2147483648, %v525_v27  ;;  %v537_v24 = vand.u32 2147483647, %v525_v27  ;;  %vm533_vm3 = vweird.f32 %v525_v27 }
  0xcc   :  { %v2486_v52 = vpop.f32.mrf.mxu2  ;;  %v2488_v55 = vpop.f32.mrf.mxu3 }
  0xcd   :  { %2760 = vst [vmem:[#allocation17_spill] sm:$0xff] %v2486_v52  ;;  %v2490_v62 = vpop.f32.mrf.mxu1  ;;  %vm538_vm5 = vcmp.eq.f32.partialorder %v537_v24, 8.507059e+37 }
  0xce   :  { %2761 = vst [vmem:[#allocation18_spill] sm:$0xff] %v2488_v55  ;;  %v540_v55 = vor.u32 1.1754944e-38, %v539_v49 }
  0xcf   :  { %2762 = vst [vmem:[#allocation19_spill] sm:$0xff] %v2490_v62 }
  0xd1   :  { %v1849_v50 = vpop.eup %1848 }
  0xd2   :  { %v529_v6 = vmul.f32 %v1849_v50, %v525_v27  ;;  %vm534_vm2 = vweird.f32 %v1849_v50 }
  0xd3   :  { %vm535_vm4 = vmor %vm533_vm3, %vm534_vm2 }
  0xd4   :  { %v530_v0 = vsub.f32 1.0, %v529_v6  ;;  %v495_v3 = vpop.f32.mrf.mxu2  ;;  %v508_v8 = vpop.f32.mrf.mxu3 }
  0xd5   :  { %v515_v10 = vadd.f32 %v508_v8, %v209_v22  ;;  %v2492_v11 = vpop.f32.mrf.mxu1  ;;  %v514_v16 = vadd.f32 %v495_v3, %v180_v19 }
  0xd6   :  { %2763 = vst [vmem:[#allocation20_spill] sm:$0xff] %v2492_v11  ;;  %v531_v17 = vmul.f32 %v1849_v50, %v530_v0 }
  0xd7   :  { %1850 = vtanh.f32 %v515_v10  ;;  %v1740_v52 = vmul.f32 -1.442695, %v514_v16 }
  0xd8   :  { %v532_v63 = vadd.f32 %v1849_v50, %v531_v17 }
  0xd9   :  { %1852 = vpow2.f32 %v1740_v52 }
  0xda   :  { %v536_v62 = vsel %vm535_vm4, %v1849_v50, %v532_v63 }
  0xdb   :  { %v541_v42 = vsel %vm538_vm5, %v540_v55, %v536_v62 }
  0xdc   :  { %v497_v6 = vpop.f32.mrf.mxu2  ;;  %v510_v39 = vpop.f32.mrf.mxu3 }
  0xdd   :  { %v1851_v38 = vpop.eup %1850  ;;  %v482_v22 = vpop.f32.mrf.mxu1 }
  0xde   :  { %v575_v8 = vmul.f32 %v1851_v38, %v541_v42  ;;  %v513_v11 = vadd.f32 %v482_v22, %v151_v26 }
  0xdf   :  { %v1853_v0 = vpop.eup %1852 }
  0xe0   :  { %v1739_v19 = vmul.f32 -1.442695, %v513_v11  ;;  %v527_v10 = vadd.f32 1.0, %v1853_v0 }
  0xe2   :  { %1854 = vpow2.f32 %v1739_v19  ;;  %vm563_vm11 = vweird.f32 %v527_v10 }
  0xe3   :  { %1856 = vrcp.f32 %v527_v10 }
  0xe5   :  { %v484_v3 = vpop.f32.mrf.mxu1 }
  0xe6   :  { %v569_v3 = vand.u32 2147483648, %v527_v10 }
  0xe8   :  { %v1855_v17 = vpop.eup %1854 }
  0xe9   :  { %v526_v27 = vadd.f32 1.0, %v1855_v17  ;;  %v1857_v49 = vpop.eup %1856  ;;  %v567_v17 = vand.u32 2147483647, %v527_v10 }
  0xea   :  { %v559_v55 = vmul.f32 %v1857_v49, %v527_v10  ;;  %vm564_vm10 = vweird.f32 %v1857_v49 }
  0xeb   :  { %1858 = vrcp.f32 %v526_v27  ;;  %v554_v39 = vand.u32 2147483648, %v526_v27  ;;  %v552_v52 = vand.u32 2147483647, %v526_v27  ;;  %vm548_vm7 = vweird.f32 %v526_v27  ;;  %vm565_vm12 = vmor %vm563_vm11, %vm564_vm10 }
  0xec   :  { %v560_v38 = vsub.f32 1.0, %v559_v55  ;;  %v570_v55 = vor.u32 1.1754944e-38, %v569_v3  ;;  %vm568_vm13 = vcmp.eq.f32.partialorder %v567_v17, 8.507059e+37 }
  0xed   :  { %v555_v42 = vor.u32 1.1754944e-38, %v554_v39  ;;  %vm553_vm9 = vcmp.eq.f32.partialorder %v552_v52, 8.507059e+37 }
  0xee   :  { %v561_v6 = vmul.f32 %v1857_v49, %v560_v38 }
  0xf0   :  { %v562_v0 = vadd.f32 %v1857_v49, %v561_v6 }
  0xf1   :  { %v1859_v50 = vpop.eup %1858 }
  0xf2   :  { %v544_v63 = vmul.f32 %v1859_v50, %v526_v27  ;;  %vm549_vm6 = vweird.f32 %v1859_v50 }
  0xf3   :  { %vm550_vm8 = vmor %vm548_vm7, %vm549_vm6 }
  0xf4   :  { %v545_v62 = vsub.f32 1.0, %v544_v63  ;;  %v566_v63 = vsel %vm565_vm12, %v1857_v49, %v562_v0 }
  0xf6   :  { %v546_v16 = vmul.f32 %v1859_v50, %v545_v62  ;;  %v571_v62 = vsel %vm568_vm13, %v570_v55, %v566_v63 }
  0xf8   :  { %v547_v26 = vadd.f32 %v1859_v50, %v546_v16 }
  0xfa   :  { %v551_v11 = vsel %vm550_vm8, %v1859_v50, %v547_v26 }
  0xfb   :  { %v556_v24 = vsel %vm553_vm9, %v555_v42, %v551_v11 }
  0xfc   :  { %v574_v22 = vmul.f32 0.0, %v556_v24 }
  0xfe   :  { %v2494_v19 = vadd.f32 %v575_v8, %v574_v22 }
 0x100   :  { %1860 = vtanh.f32 %v2494_v19 }
 0x106   :  { %v1861_v27 = vpop.eup %1860 }
 0x107   :  { %v578_v50 = vmul.f32 %v1861_v27, %v571_v62 }
 0x109   :  { %v586_v39 = vpack.c.bf16 %v578_v50, %v578_v50 }
 0x10b   :  { %595 = vmatmul.bf16.vlgmr.msra.gmra.mxu0 %v586_v39  ;;  %608 = vmatmul.bf16.vlgmr.msrb.gmra.mxu1 %v586_v39 }
 0x10c   :  { %621 = vmatmul.bf16.vlgmr.msra.gmra.mxu2 %v586_v39  ;;  %634 = vmatmul.bf16.vlgmr.msra.gmra.mxu3 %v586_v39 }
 0x10d   :  { %841 = vmatpush.bf16.msra.mxu0 %v2052_v31  ;;  %854 = vmatpush.bf16.msrb.mxu1 %v2095_v46 }
 0x10e   :  { %867 = vmatpush.bf16.msra.mxu2 %v2078_v40  ;;  %880 = vmatpush.bf16.msra.mxu3 %v2080_v41 }
 0x111   :  { %842 = vmatpush.bf16.msra.mxu0 %v2083_v43  ;;  %855 = vmatpush.bf16.msrb.mxu1 %v2133_v57 }
 0x112   :  { %868 = vmatpush.bf16.msra.mxu2 %v2114_v51  ;;  %881 = vmatpush.bf16.msra.mxu3 %v2144_v61 }
 0x115   :  { %843 = vmatpush.bf16.msra.mxu0 %v2121_v53  ;;  %856 = vmatpush.bf16.msrb.mxu1 %v2177_v9 }
 0x116   :  { %869 = vmatpush.bf16.msra.mxu2 %v2156_v1  ;;  %882 = vmatpush.bf16.msra.mxu3 %v2159_v2 }
 0x119   :  { %844 = vmatpush.bf16.msra.mxu0 %v2165_v4  ;;  %857 = vmatpush.bf16.msrb.mxu1 %v2212_v20 }
 0x11a   :  { %870 = vmatpush.bf16.msra.mxu2 %v2187_v12  ;;  %883 = vmatpush.bf16.msra.mxu3 %v2189_v13 }
 0x11d   :  { %845 = vmatpush.bf16.msra.mxu0 %v2192_v14  ;;  %858 = vmatpush.bf16.msrb.mxu1 %v2265_v37 }
 0x11e   :  { %871 = vmatpush.bf16.msra.mxu2 %v2238_v29  ;;  %884 = vmatpush.bf16.msra.mxu3 %v2253_v33 }
 0x121   :  { %846 = vmatpush.bf16.msra.mxu0 %v2217_v21  ;;  %859 = vmatpush.bf16.msrb.mxu1 %v2305_v56 }
 0x122   :  { %872 = vmatpush.bf16.msra.mxu2 %v2281_v45  ;;  %885 = vmatpush.bf16.msra.mxu3 %v2283_v47 }
 0x125   :  { %847 = vmatpush.bf16.msra.mxu0 %v2278_v44  ;;  %860 = vmatpush.bf16.msrb.mxu1 %v2353_v15 }
 0x126   :  { %873 = vmatpush.bf16.msra.mxu2 %v2307_v58  ;;  %886 = vmatpush.bf16.msra.mxu3 %v2313_v60 }
 0x129   :  { %848 = vmatpush.bf16.msra.mxu0 %v2310_v59  ;;  %861 = vmatpush.bf16.msrb.mxu1 %v2364_v18 }
 0x12a   :  { %874 = vmatpush.bf16.msra.mxu2 %v2329_v5  ;;  %887 = vmatpush.bf16.msra.mxu3 %v2333_v7 }
 0x188   :  { %v596_v8 = vpop.f32.mrf.mxu0  ;;  %v609_v10 = vpop.f32.mrf.mxu1 }
 0x189   :  { %v639_v49 = vadd.f32 %v596_v8, %v2440_v23  ;;  %v640_v16 = vadd.f32 %v609_v10, %v2456_v36 }
 0x18b   :  { %v1741_v52 = vmul.f32 -1.442695, %v639_v49  ;;  %v1742_v38 = vmul.f32 -1.442695, %v640_v16 }
 0x18d   :  { %1862 = vpow2.f32 %v1741_v52 }
 0x18e   :  { %1864 = vpow2.f32 %v1742_v38 }
 0x18f   :  { %v622_v26 = vpop.f32.mrf.mxu2  ;;  %v635_v42 = vpop.f32.mrf.mxu3 }
 0x190   :  { %v641_v11 = vadd.f32 %v622_v26, %v2444_v25  ;;  %v598_v24 = vpop.f32.mrf.mxu0  ;;  %v611_v6 = vpop.f32.mrf.mxu1  ;;  %v642_v50 = vadd.f32 %v635_v42, %v2446_v28 }
 0x192   :  { %v1743_v22 = vmul.f32 -1.442695, %v641_v11 }
 0x193   :  { %v1863_v0 = vpop.eup %1862 }
 0x194   :  { %v1865_v3 = vpop.eup %1864  ;;  %v652_v17 = vadd.f32 1.0, %v1863_v0  ;;  %1866 = vpow2.f32 %v1743_v22 }
 0x195   :  { %v653_v63 = vadd.f32 1.0, %v1865_v3 }
 0x196   :  { %1868 = vrcp.f32 %v652_v17  ;;  %v666_v16 = vand.u32 2147483648, %v652_v17  ;;  %v664_v26 = vand.u32 2147483647, %v652_v17  ;;  %vm660_vm0 = vweird.f32 %v652_v17 }
 0x197   :  { %1870 = vrcp.f32 %v653_v63  ;;  %v624_v23 = vpop.f32.mrf.mxu2  ;;  %v637_v36 = vpop.f32.mrf.mxu3  ;;  %v681_v52 = vand.u32 2147483648, %v653_v63  ;;  %v679_v24 = vand.u32 2147483647, %v653_v63  ;;  %vm675_vm1 = vweird.f32 %v653_v63 }
 0x198   :  { %v667_v42 = vor.u32 1.1754944e-38, %v666_v16  ;;  %vm665_vm4 = vcmp.eq.f32.partialorder %v664_v26, 8.507059e+37 }
 0x199   :  { %v682_v3 = vor.u32 1.1754944e-38, %v681_v52  ;;  %vm680_vm5 = vcmp.eq.f32.partialorder %v679_v24, 8.507059e+37 }
 0x19a   :  { %v1867_v55 = vpop.eup %1866 }
 0x19b   :  { %v654_v27 = vadd.f32 1.0, %v1867_v55 }
 0x19c   :  { %v1869_v62 = vpop.eup %1868 }
 0x19d   :  { %v1871_v39 = vpop.eup %1870  ;;  %v656_v8 = vmul.f32 %v1869_v62, %v652_v17  ;;  %1872 = vrcp.f32 %v654_v27  ;;  %vm661_vm14 = vweird.f32 %v1869_v62  ;;  %v696_v16 = vand.u32 2147483648, %v654_v27 }
 0x19e   :  { %v671_v25 = vmul.f32 %v1871_v39, %v653_v63  ;;  %1874 = vtanh.f32 %v642_v50  ;;  %vm676_vm15 = vweird.f32 %v1871_v39  ;;  %vm662_vm2 = vmor %vm660_vm0, %vm661_vm14  ;;  %vm690_vm7 = vweird.f32 %v654_v27 }
 0x19f   :  { %v657_v10 = vsub.f32 1.0, %v656_v8  ;;  %vm677_vm3 = vmor %vm675_vm1, %vm676_vm15  ;;  %v697_v26 = vor.u32 1.1754944e-38, %v696_v16 }
 0x1a0   :  { %v672_v49 = vsub.f32 1.0, %v671_v25 }
 0x1a1   :  { %v658_v38 = vmul.f32 %v1869_v62, %v657_v10 }
 0x1a2   :  { %v673_v11 = vmul.f32 %v1871_v39, %v672_v49 }
 0x1a3   :  { %v1873_v6 = vpop.eup %1872  ;;  %v659_v22 = vadd.f32 %v1869_v62, %v658_v38 }
 0x1a4   :  { %v686_v28 = vmul.f32 %v1873_v6, %v654_v27  ;;  %v674_v0 = vadd.f32 %v1871_v39, %v673_v11  ;;  %v1875_v36 = vpop.eup %1874  ;;  %vm691_vm6 = vweird.f32 %v1873_v6 }
 0x1a5   :  { %v663_v23 = vsel %vm662_vm2, %v1869_v62, %v659_v22  ;;  %v694_v62 = vand.u32 2147483647, %v654_v27  ;;  %vm692_vm8 = vmor %vm690_vm7, %vm691_vm6 }
 0x1a6   :  { %v687_v55 = vsub.f32 1.0, %v686_v28  ;;  %v668_v50 = vsel %vm665_vm4, %v667_v42, %v663_v23  ;;  %v678_v8 = vsel %vm677_vm3, %v1871_v39, %v674_v0 }
 0x1a7   :  { %v683_v25 = vsel %vm680_vm5, %v682_v3, %v678_v8  ;;  %v702_v10 = vmul.f32 %v1875_v36, %v668_v50  ;;  %vm695_vm9 = vcmp.eq.f32.partialorder %v694_v62, 8.507059e+37 }
 0x1a8   :  { %v701_v49 = vmul.f32 %v683_v25, %v2494_v19  ;;  %v688_v38 = vmul.f32 %v1873_v6, %v687_v55 }
 0x1aa   :  { %v2534_v17 = vadd.f32 %v702_v10, %v701_v49  ;;  %v689_v63 = vadd.f32 %v1873_v6, %v688_v38 }
 0x1ac   :  { %1876 = vtanh.f32 %v2534_v17  ;;  %v693_v52 = vsel %vm692_vm8, %v1873_v6, %v689_v63 }
 0x1ad   :  { %v698_v11 = vsel %vm695_vm9, %v697_v26, %v693_v52 }
 0x1b2   :  { %v1877_v39 = vpop.eup %1876 }
 0x1b3   :  { %v705_v24 = vmul.f32 %v1877_v39, %v698_v11 }
 0x1b5   :  { %v713_v22 = vpack.c.bf16 %v705_v24, %v705_v24 }
 0x1b7   :  { %722 = vmatmul.bf16.vlgmr.msrb.gmra.mxu0 %v713_v22  ;;  %735 = vmatmul.bf16.vlgmr.msra.gmra.mxu1 %v713_v22 }
 0x1b8   :  { %748 = vmatmul.bf16.vlgmr.msrb.gmra.mxu2 %v713_v22  ;;  %761 = vmatmul.bf16.vlgmr.msrb.gmra.mxu3 %v713_v22 }
 0x1b9   :  { %968 = vmatpush.bf16.msrb.mxu0 %v2052_v31  ;;  %981 = vmatpush.bf16.msra.mxu1 %v2095_v46 }
 0x1ba   :  { %994 = vmatpush.bf16.msrb.mxu2 %v2078_v40  ;;  %1007 = vmatpush.bf16.msrb.mxu3 %v2080_v41 }
 0x1bd   :  { %969 = vmatpush.bf16.msrb.mxu0 %v2083_v43  ;;  %982 = vmatpush.bf16.msra.mxu1 %v2133_v57 }
 0x1be   :  { %995 = vmatpush.bf16.msrb.mxu2 %v2114_v51  ;;  %1008 = vmatpush.bf16.msrb.mxu3 %v2144_v61 }
 0x1c1   :  { %970 = vmatpush.bf16.msrb.mxu0 %v2121_v53  ;;  %983 = vmatpush.bf16.msra.mxu1 %v2177_v9 }
 0x1c2   :  { %996 = vmatpush.bf16.msrb.mxu2 %v2156_v1  ;;  %1009 = vmatpush.bf16.msrb.mxu3 %v2159_v2 }
 0x1c5   :  { %971 = vmatpush.bf16.msrb.mxu0 %v2165_v4  ;;  %984 = vmatpush.bf16.msra.mxu1 %v2212_v20 }
 0x1c6   :  { %997 = vmatpush.bf16.msrb.mxu2 %v2187_v12  ;;  %1010 = vmatpush.bf16.msrb.mxu3 %v2189_v13 }
 0x1c9   :  { %972 = vmatpush.bf16.msrb.mxu0 %v2192_v14  ;;  %985 = vmatpush.bf16.msra.mxu1 %v2265_v37 }
 0x1ca   :  { %998 = vmatpush.bf16.msrb.mxu2 %v2238_v29  ;;  %1011 = vmatpush.bf16.msrb.mxu3 %v2253_v33 }
 0x1cd   :  { %973 = vmatpush.bf16.msrb.mxu0 %v2217_v21  ;;  %986 = vmatpush.bf16.msra.mxu1 %v2305_v56 }
 0x1ce   :  { %999 = vmatpush.bf16.msrb.mxu2 %v2281_v45  ;;  %1012 = vmatpush.bf16.msrb.mxu3 %v2283_v47 }
 0x1d1   :  { %974 = vmatpush.bf16.msrb.mxu0 %v2278_v44  ;;  %987 = vmatpush.bf16.msra.mxu1 %v2353_v15 }
 0x1d2   :  { %1000 = vmatpush.bf16.msrb.mxu2 %v2307_v58  ;;  %1013 = vmatpush.bf16.msrb.mxu3 %v2313_v60 }
 0x1d5   :  { %975 = vmatpush.bf16.msrb.mxu0 %v2310_v59  ;;  %988 = vmatpush.bf16.msra.mxu1 %v2364_v18 }
 0x1d6   :  { %1001 = vmatpush.bf16.msrb.mxu2 %v2329_v5  ;;  %1014 = vmatpush.bf16.msrb.mxu3 %v2333_v7 }
 0x234   :  { %v723_v19 = vpop.f32.mrf.mxu0  ;;  %v736_v27 = vpop.f32.mrf.mxu1 }
 0x235   :  { %v766_v6 = vadd.f32 %v723_v19, %v2448_v30  ;;  %v767_v28 = vadd.f32 %v736_v27, %v2464_v48 }
 0x237   :  { %v1744_v42 = vmul.f32 -1.442695, %v766_v6  ;;  %v1745_v0 = vmul.f32 -1.442695, %v767_v28 }
 0x239   :  { %1878 = vpow2.f32 %v1744_v42 }
 0x23a   :  { %1880 = vpow2.f32 %v1745_v0 }
 0x23b   :  { %v749_v3 = vpop.f32.mrf.mxu2  ;;  %v762_v23 = vpop.f32.mrf.mxu3 }
 0x23c   :  { %v768_v36 = vadd.f32 %v749_v3, %v2450_v32  ;;  %v725_v55 = vpop.f32.mrf.mxu0  ;;  %v738_v50 = vpop.f32.mrf.mxu1  ;;  %v769_v52 = vadd.f32 %v762_v23, %v2452_v34 }
 0x23e   :  { %v1746_v8 = vmul.f32 -1.442695, %v768_v36 }
 0x23f   :  { %v1879_v25 = vpop.eup %1878 }
 0x240   :  { %v1881_v10 = vpop.eup %1880  ;;  %v779_v49 = vadd.f32 1.0, %v1879_v25  ;;  %1882 = vpow2.f32 %v1746_v8 }
 0x241   :  { %v780_v38 = vadd.f32 1.0, %v1881_v10 }
 0x242   :  { %1884 = vrcp.f32 %v779_v49  ;;  %v793_v22 = vand.u32 2147483648, %v779_v49  ;;  %v791_v6 = vand.u32 2147483647, %v779_v49  ;;  %vm787_vm12 = vweird.f32 %v779_v49 }
 0x243   :  { %1886 = vrcp.f32 %v780_v38  ;;  %v751_v30 = vpop.f32.mrf.mxu2  ;;  %v764_v48 = vpop.f32.mrf.mxu3  ;;  %v808_v19 = vand.u32 2147483648, %v780_v38  ;;  %v806_v42 = vand.u32 2147483647, %v780_v38  ;;  %vm802_vm13 = vweird.f32 %v780_v38 }
 0x244   :  { %v794_v23 = vor.u32 1.1754944e-38, %v793_v22  ;;  %vm792_vm0 = vcmp.eq.f32.partialorder %v791_v6, 8.507059e+37 }
 0x245   :  { %v809_v55 = vor.u32 1.1754944e-38, %v808_v19  ;;  %vm807_vm1 = vcmp.eq.f32.partialorder %v806_v42, 8.507059e+37 }
 0x246   :  { %v1883_v63 = vpop.eup %1882 }
 0x247   :  { %v781_v16 = vadd.f32 1.0, %v1883_v63 }
 0x248   :  { %v1885_v62 = vpop.eup %1884 }
 0x249   :  { %v1887_v26 = vpop.eup %1886  ;;  %v783_v39 = vmul.f32 %v1885_v62, %v779_v49  ;;  %1888 = vrcp.f32 %v781_v16  ;;  %vm788_vm10 = vweird.f32 %v1885_v62  ;;  %vm817_vm3 = vweird.f32 %v781_v16 }
 0x24a   :  { %v798_v32 = vmul.f32 %v1887_v26, %v780_v38  ;;  %1890 = vtanh.f32 %v769_v52  ;;  %vm803_vm11 = vweird.f32 %v1887_v26  ;;  %vm789_vm14 = vmor %vm787_vm12, %vm788_vm10 }
 0x24b   :  { %v784_v11 = vsub.f32 1.0, %v783_v39  ;;  %vm804_vm15 = vmor %vm802_vm13, %vm803_vm11 }
 0x24c   :  { %v799_v24 = vsub.f32 1.0, %v798_v32  ;;  %v823_v32 = vand.u32 2147483648, %v781_v16 }
 0x24d   :  { %v785_v27 = vmul.f32 %v1885_v62, %v784_v11 }
 0x24e   :  { %v800_v28 = vmul.f32 %v1887_v26, %v799_v24  ;;  %v824_v24 = vor.u32 1.1754944e-38, %v823_v32 }
 0x24f   :  { %v1889_v0 = vpop.eup %1888  ;;  %v786_v3 = vadd.f32 %v1885_v62, %v785_v27 }
 0x250   :  { %v813_v34 = vmul.f32 %v1889_v0, %v781_v16  ;;  %v801_v36 = vadd.f32 %v1887_v26, %v800_v28  ;;  %v1891_v8 = vpop.eup %1890  ;;  %vm818_vm2 = vweird.f32 %v1889_v0 }
 0x251   :  { %v790_v50 = vsel %vm789_vm14, %v1885_v62, %v786_v3  ;;  %v821_v62 = vand.u32 2147483647, %v781_v16  ;;  %vm819_vm4 = vmor %vm817_vm3, %vm818_vm2 }
 0x252   :  { %v814_v25 = vsub.f32 1.0, %v813_v34  ;;  %v795_v10 = vsel %vm792_vm0, %v794_v23, %v790_v50  ;;  %v805_v30 = vsel %vm804_vm15, %v1887_v26, %v801_v36  ;;  %v2764_v23 = vld [vmem:[#allocation5_spill] sm:$0xff] }
 0x253   :  { %v810_v48 = vsel %vm807_vm1, %v809_v55, %v805_v30  ;;  %v829_v63 = vmul.f32 %v1891_v8, %v795_v10  ;;  %vm822_vm5 = vcmp.eq.f32.partialorder %v821_v62, 8.507059e+37 }
 0x254   :  { %v828_v52 = vmul.f32 %v810_v48, %v2534_v17  ;;  %v815_v39 = vmul.f32 %v1889_v0, %v814_v25 }
 0x256   :  { %v2574_v49 = vadd.f32 %v829_v63, %v828_v52  ;;  %v816_v38 = vadd.f32 %v1889_v0, %v815_v39 }
 0x258   :  { %1892 = vtanh.f32 %v2574_v49  ;;  %v820_v11 = vsel %vm819_vm4, %v1889_v0, %v816_v38  ;;  %v2765_v38 = vld [vmem:[#allocation6_spill] sm:$0xff] }
 0x259   :  { %v825_v22 = vsel %vm822_vm5, %v824_v24, %v820_v11 }
 0x25e   :  { %v1893_v26 = vpop.eup %1892 }
 0x25f   :  { %v832_v19 = vmul.f32 %v1893_v26, %v825_v22 }
 0x261   :  { %v840_v27 = vpack.c.bf16 %v832_v19, %v832_v19 }
 0x263   :  { %849 = vmatmul.bf16.vlgmr.msra.gmra.mxu0 %v840_v27  ;;  %862 = vmatmul.bf16.vlgmr.msrb.gmra.mxu1 %v840_v27 }
 0x264   :  { %875 = vmatmul.bf16.vlgmr.msra.gmra.mxu2 %v840_v27  ;;  %888 = vmatmul.bf16.vlgmr.msra.gmra.mxu3 %v840_v27 }
 0x265   :  { %1095 = vmatpush.bf16.msra.mxu0 %v2052_v31  ;;  %1108 = vmatpush.bf16.msrb.mxu1 %v2095_v46 }
 0x266   :  { %1121 = vmatpush.bf16.msra.mxu2 %v2078_v40  ;;  %1134 = vmatpush.bf16.msra.mxu3 %v2080_v41 }
 0x269   :  { %1096 = vmatpush.bf16.msra.mxu0 %v2083_v43  ;;  %1109 = vmatpush.bf16.msrb.mxu1 %v2133_v57 }
 0x26a   :  { %1122 = vmatpush.bf16.msra.mxu2 %v2114_v51  ;;  %1135 = vmatpush.bf16.msra.mxu3 %v2144_v61 }
 0x26d   :  { %1097 = vmatpush.bf16.msra.mxu0 %v2121_v53  ;;  %1110 = vmatpush.bf16.msrb.mxu1 %v2177_v9 }
 0x26e   :  { %1123 = vmatpush.bf16.msra.mxu2 %v2156_v1  ;;  %1136 = vmatpush.bf16.msra.mxu3 %v2159_v2 }
 0x271   :  { %1098 = vmatpush.bf16.msra.mxu0 %v2165_v4  ;;  %1111 = vmatpush.bf16.msrb.mxu1 %v2212_v20 }
 0x272   :  { %1124 = vmatpush.bf16.msra.mxu2 %v2187_v12  ;;  %1137 = vmatpush.bf16.msra.mxu3 %v2189_v13 }
 0x275   :  { %1099 = vmatpush.bf16.msra.mxu0 %v2192_v14  ;;  %1112 = vmatpush.bf16.msrb.mxu1 %v2265_v37 }
 0x276   :  { %1125 = vmatpush.bf16.msra.mxu2 %v2238_v29  ;;  %1138 = vmatpush.bf16.msra.mxu3 %v2253_v33 }
 0x279   :  { %1100 = vmatpush.bf16.msra.mxu0 %v2217_v21  ;;  %1113 = vmatpush.bf16.msrb.mxu1 %v2305_v56 }
 0x27a   :  { %1126 = vmatpush.bf16.msra.mxu2 %v2281_v45  ;;  %1139 = vmatpush.bf16.msra.mxu3 %v2283_v47 }
 0x27d   :  { %1101 = vmatpush.bf16.msra.mxu0 %v2278_v44  ;;  %1114 = vmatpush.bf16.msrb.mxu1 %v2353_v15 }
 0x27e   :  { %1127 = vmatpush.bf16.msra.mxu2 %v2307_v58  ;;  %1140 = vmatpush.bf16.msra.mxu3 %v2313_v60 }
 0x281   :  { %1102 = vmatpush.bf16.msra.mxu0 %v2310_v59  ;;  %1115 = vmatpush.bf16.msrb.mxu1 %v2364_v18 }
 0x282   :  { %1128 = vmatpush.bf16.msra.mxu2 %v2329_v5  ;;  %1141 = vmatpush.bf16.msra.mxu3 %v2333_v7 }
 0x2e0   :  { %v850_v17 = vpop.f32.mrf.mxu0  ;;  %v863_v16 = vpop.f32.mrf.mxu1 }
 0x2e1   :  { %v893_v6 = vadd.f32 %v850_v17, %v2454_v35  ;;  %v894_v28 = vadd.f32 %v863_v16, %v2472_v54 }
 0x2e3   :  { %v1747_v42 = vmul.f32 -1.442695, %v893_v6  ;;  %v1748_v0 = vmul.f32 -1.442695, %v894_v28 }
 0x2e5   :  { %1894 = vpow2.f32 %v1747_v42 }
 0x2e6   :  { %1896 = vpow2.f32 %v1748_v0 }
 0x2e7   :  { %v876_v3 = vpop.f32.mrf.mxu2  ;;  %v889_v34 = vpop.f32.mrf.mxu3 }
 0x2e8   :  { %v895_v36 = vadd.f32 %v876_v3, %v2764_v23  ;;  %v852_v55 = vpop.f32.mrf.mxu0  ;;  %v865_v50 = vpop.f32.mrf.mxu1  ;;  %v896_v32 = vadd.f32 %v889_v34, %v2765_v38 }
 0x2ea   :  { %v1749_v8 = vmul.f32 -1.442695, %v895_v36 }
 0x2eb   :  { %v1895_v25 = vpop.eup %1894 }
 0x2ec   :  { %v1897_v10 = vpop.eup %1896  ;;  %v906_v30 = vadd.f32 1.0, %v1895_v25  ;;  %1898 = vpow2.f32 %v1749_v8 }
 0x2ed   :  { %v907_v48 = vadd.f32 1.0, %v1897_v10 }
 0x2ee   :  { %1900 = vrcp.f32 %v906_v30  ;;  %v920_v19 = vand.u32 2147483648, %v906_v30  ;;  %v918_v16 = vand.u32 2147483647, %v906_v30  ;;  %vm914_vm8 = vweird.f32 %v906_v30 }
 0x2ef   :  { %1902 = vrcp.f32 %v907_v48  ;;  %v878_v35 = vpop.f32.mrf.mxu2  ;;  %v891_v54 = vpop.f32.mrf.mxu3  ;;  %v935_v27 = vand.u32 2147483648, %v907_v48  ;;  %v933_v28 = vand.u32 2147483647, %v907_v48  ;;  %vm929_vm9 = vweird.f32 %v907_v48 }
 0x2f0   :  { %v921_v34 = vor.u32 1.1754944e-38, %v920_v19  ;;  %vm919_vm12 = vcmp.eq.f32.partialorder %v918_v16, 8.507059e+37  ;;  %v2767_v16 = vld [vmem:[#allocation13_spill] sm:$0xff] }
 0x2f1   :  { %v936_v36 = vor.u32 1.1754944e-38, %v935_v27  ;;  %vm934_vm13 = vcmp.eq.f32.partialorder %v933_v28, 8.507059e+37  ;;  %v2766_v27 = vld [vmem:[#allocation7_spill] sm:$0xff] }
 0x2f2   :  { %v1899_v63 = vpop.eup %1898 }
 0x2f3   :  { %v908_v52 = vadd.f32 1.0, %v1899_v63 }
 0x2f4   :  { %v1901_v39 = vpop.eup %1900 }
 0x2f5   :  { %v1903_v62 = vpop.eup %1902  ;;  %v910_v11 = vmul.f32 %v1901_v39, %v906_v30  ;;  %1904 = vrcp.f32 %v908_v52  ;;  %vm915_vm6 = vweird.f32 %v1901_v39  ;;  %vm944_vm15 = vweird.f32 %v908_v52 }
 0x2f6   :  { %v925_v24 = vmul.f32 %v1903_v62, %v907_v48  ;;  %1906 = vtanh.f32 %v896_v32  ;;  %vm930_vm7 = vweird.f32 %v1903_v62  ;;  %vm916_vm10 = vmor %vm914_vm8, %vm915_vm6  ;;  %v950_v32 = vand.u32 2147483648, %v908_v52 }
 0x2f7   :  { %v911_v26 = vsub.f32 1.0, %v910_v11  ;;  %vm931_vm11 = vmor %vm929_vm9, %vm930_vm7 }
 0x2f8   :  { %v926_v22 = vsub.f32 1.0, %v925_v24  ;;  %v951_v24 = vor.u32 1.1754944e-38, %v950_v32 }
 0x2f9   :  { %v912_v17 = vmul.f32 %v1901_v39, %v911_v26 }
 0x2fa   :  { %v927_v6 = vmul.f32 %v1903_v62, %v926_v22 }
 0x2fb   :  { %v1905_v42 = vpop.eup %1904  ;;  %v913_v0 = vadd.f32 %v1901_v39, %v912_v17 }
 0x2fc   :  { %v940_v3 = vmul.f32 %v1905_v42, %v908_v52  ;;  %v928_v23 = vadd.f32 %v1903_v62, %v927_v6  ;;  %v1907_v50 = vpop.eup %1906  ;;  %vm945_vm14 = vweird.f32 %v1905_v42 }
 0x2fd   :  { %v917_v55 = vsel %vm916_vm10, %v1901_v39, %v913_v0  ;;  %v948_v39 = vand.u32 2147483647, %v908_v52  ;;  %vm946_vm0 = vmor %vm944_vm15, %vm945_vm14 }
 0x2fe   :  { %v941_v8 = vsub.f32 1.0, %v940_v3  ;;  %v922_v25 = vsel %vm919_vm12, %v921_v34, %v917_v55  ;;  %v932_v10 = vsel %vm931_vm11, %v1903_v62, %v928_v23  ;;  %v2768_v34 = vld [vmem:[#allocation8_spill] sm:$0xff] }
 0x2ff   :  { %v937_v35 = vsel %vm934_vm13, %v936_v36, %v932_v10  ;;  %v956_v54 = vmul.f32 %v1907_v50, %v922_v25  ;;  %vm949_vm1 = vcmp.eq.f32.partialorder %v948_v39, 8.507059e+37  ;;  %v2769_v39 = vld [vmem:[#allocation9_spill] sm:$0xff] }
 0x300   :  { %v955_v63 = vmul.f32 %v937_v35, %v2574_v49  ;;  %v942_v38 = vmul.f32 %v1905_v42, %v941_v8 }
 0x302   :  { %v2614_v30 = vadd.f32 %v956_v54, %v955_v63  ;;  %v943_v48 = vadd.f32 %v1905_v42, %v942_v38 }
 0x304   :  { %1908 = vtanh.f32 %v2614_v30  ;;  %v947_v11 = vsel %vm946_vm0, %v1905_v42, %v943_v48 }
 0x305   :  { %v952_v26 = vsel %vm949_vm1, %v951_v24, %v947_v11 }
 0x30a   :  { %v1909_v62 = vpop.eup %1908 }
 0x30b   :  { %v959_v22 = vmul.f32 %v1909_v62, %v952_v26 }
 0x30d   :  { %v967_v19 = vpack.c.bf16 %v959_v22, %v959_v22 }
 0x30f   :  { %976 = vmatmul.bf16.vlgmr.msrb.gmra.mxu0 %v967_v19  ;;  %989 = vmatmul.bf16.vlgmr.msra.gmra.mxu1 %v967_v19 }
 0x310   :  { %1002 = vmatmul.bf16.vlgmr.msrb.gmra.mxu2 %v967_v19  ;;  %1015 = vmatmul.bf16.vlgmr.msrb.gmra.mxu3 %v967_v19 }
 0x311   :  { %1222 = vmatpush.bf16.msrb.mxu0 %v2052_v31  ;;  %1235 = vmatpush.bf16.msra.mxu1 %v2095_v46 }
 0x312   :  { %1248 = vmatpush.bf16.msrb.mxu2 %v2078_v40  ;;  %1261 = vmatpush.bf16.msrb.mxu3 %v2080_v41 }
 0x315   :  { %1223 = vmatpush.bf16.msrb.mxu0 %v2083_v43  ;;  %1236 = vmatpush.bf16.msra.mxu1 %v2133_v57 }
 0x316   :  { %1249 = vmatpush.bf16.msrb.mxu2 %v2114_v51  ;;  %1262 = vmatpush.bf16.msrb.mxu3 %v2144_v61 }
 0x319   :  { %1224 = vmatpush.bf16.msrb.mxu0 %v2121_v53  ;;  %1237 = vmatpush.bf16.msra.mxu1 %v2177_v9 }
 0x31a   :  { %1250 = vmatpush.bf16.msrb.mxu2 %v2156_v1  ;;  %1263 = vmatpush.bf16.msrb.mxu3 %v2159_v2 }
 0x31d   :  { %1225 = vmatpush.bf16.msrb.mxu0 %v2165_v4  ;;  %1238 = vmatpush.bf16.msra.mxu1 %v2212_v20 }
 0x31e   :  { %1251 = vmatpush.bf16.msrb.mxu2 %v2187_v12  ;;  %1264 = vmatpush.bf16.msrb.mxu3 %v2189_v13 }
 0x321   :  { %1226 = vmatpush.bf16.msrb.mxu0 %v2192_v14  ;;  %1239 = vmatpush.bf16.msra.mxu1 %v2265_v37 }
 0x322   :  { %1252 = vmatpush.bf16.msrb.mxu2 %v2238_v29  ;;  %1265 = vmatpush.bf16.msrb.mxu3 %v2253_v33 }
 0x325   :  { %1227 = vmatpush.bf16.msrb.mxu0 %v2217_v21  ;;  %1240 = vmatpush.bf16.msra.mxu1 %v2305_v56 }
 0x326   :  { %1253 = vmatpush.bf16.msrb.mxu2 %v2281_v45  ;;  %1266 = vmatpush.bf16.msrb.mxu3 %v2283_v47 }
 0x329   :  { %1228 = vmatpush.bf16.msrb.mxu0 %v2278_v44  ;;  %1241 = vmatpush.bf16.msra.mxu1 %v2353_v15 }
 0x32a   :  { %1254 = vmatpush.bf16.msrb.mxu2 %v2307_v58  ;;  %1267 = vmatpush.bf16.msrb.mxu3 %v2313_v60 }
 0x32d   :  { %1229 = vmatpush.bf16.msrb.mxu0 %v2310_v59  ;;  %1242 = vmatpush.bf16.msra.mxu1 %v2364_v18 }
 0x32e   :  { %1255 = vmatpush.bf16.msrb.mxu2 %v2329_v5  ;;  %1268 = vmatpush.bf16.msrb.mxu3 %v2333_v7 }
 0x38c   :  { %v977_v49 = vpop.f32.mrf.mxu0  ;;  %v990_v52 = vpop.f32.mrf.mxu1 }
 0x38d   :  { %v1020_v17 = vadd.f32 %v977_v49, %v2766_v27  ;;  %v1021_v6 = vadd.f32 %v990_v52, %v2767_v16 }
 0x38f   :  { %v1750_v28 = vmul.f32 -1.442695, %v1020_v17  ;;  %v1751_v42 = vmul.f32 -1.442695, %v1021_v6 }
 0x391   :  { %1910 = vpow2.f32 %v1750_v28 }
 0x392   :  { %1912 = vpow2.f32 %v1751_v42 }
 0x393   :  { %v1003_v0 = vpop.f32.mrf.mxu2  ;;  %v1016_v3 = vpop.f32.mrf.mxu3 }
 0x394   :  { %v1022_v23 = vadd.f32 %v1003_v0, %v2768_v34  ;;  %v979_v36 = vpop.f32.mrf.mxu0  ;;  %v992_v55 = vpop.f32.mrf.mxu1  ;;  %v1023_v11 = vadd.f32 %v1016_v3, %v2769_v39 }
 0x396   :  { %v1752_v50 = vmul.f32 -1.442695, %v1022_v23 }
 0x397   :  { %v1911_v8 = vpop.eup %1910 }
 0x398   :  { %v1913_v25 = vpop.eup %1912  ;;  %v1033_v10 = vadd.f32 1.0, %v1911_v8  ;;  %1914 = vpow2.f32 %v1752_v50 }
 0x399   :  { %v1034_v35 = vadd.f32 1.0, %v1913_v25 }
 0x39a   :  { %1916 = vrcp.f32 %v1033_v10  ;;  %v1047_v49 = vand.u32 2147483648, %v1033_v10  ;;  %v1045_v17 = vand.u32 2147483647, %v1033_v10  ;;  %vm1041_vm4 = vweird.f32 %v1033_v10 }
 0x39b   :  { %1918 = vrcp.f32 %v1034_v35  ;;  %v1005_v54 = vpop.f32.mrf.mxu2  ;;  %v1018_v63 = vpop.f32.mrf.mxu3  ;;  %v1062_v52 = vand.u32 2147483648, %v1034_v35  ;;  %v1060_v6 = vand.u32 2147483647, %v1034_v35  ;;  %vm1056_vm5 = vweird.f32 %v1034_v35 }
 0x39c   :  { %v1048_v3 = vor.u32 1.1754944e-38, %v1047_v49  ;;  %vm1046_vm8 = vcmp.eq.f32.partialorder %v1045_v17, 8.507059e+37 }
 0x39d   :  { %v1063_v23 = vor.u32 1.1754944e-38, %v1062_v52  ;;  %vm1061_vm9 = vcmp.eq.f32.partialorder %v1060_v6, 8.507059e+37 }
 0x39e   :  { %v1915_v38 = vpop.eup %1914 }
 0x39f   :  { %v1035_v48 = vadd.f32 1.0, %v1915_v38 }
 0x3a0   :  { %v1917_v32 = vpop.eup %1916 }
 0x3a1   :  { %v1919_v24 = vpop.eup %1918  ;;  %v1037_v62 = vmul.f32 %v1917_v32, %v1033_v10  ;;  %1920 = vrcp.f32 %v1035_v48  ;;  %vm1042_vm2 = vweird.f32 %v1917_v32  ;;  %vm1071_vm11 = vweird.f32 %v1035_v48 }
 0x3a2   :  { %v1052_v26 = vmul.f32 %v1919_v24, %v1034_v35  ;;  %1922 = vtanh.f32 %v1023_v11  ;;  %vm1057_vm3 = vweird.f32 %v1919_v24  ;;  %vm1043_vm6 = vmor %vm1041_vm4, %vm1042_vm2  ;;  %v1077_v11 = vand.u32 2147483648, %v1035_v48 }
 0x3a3   :  { %v1038_v22 = vsub.f32 1.0, %v1037_v62  ;;  %vm1058_vm7 = vmor %vm1056_vm5, %vm1057_vm3 }
 0x3a4   :  { %v1053_v19 = vsub.f32 1.0, %v1052_v26  ;;  %v1078_v26 = vor.u32 1.1754944e-38, %v1077_v11 }
 0x3a5   :  { %v1039_v27 = vmul.f32 %v1917_v32, %v1038_v22 }
 0x3a6   :  { %v1054_v16 = vmul.f32 %v1919_v24, %v1053_v19 }
 0x3a7   :  { %v1921_v28 = vpop.eup %1920  ;;  %v1040_v42 = vadd.f32 %v1917_v32, %v1039_v27 }
 0x3a8   :  { %v1067_v0 = vmul.f32 %v1921_v28, %v1035_v48  ;;  %v1055_v34 = vadd.f32 %v1919_v24, %v1054_v16  ;;  %v1923_v55 = vpop.eup %1922  ;;  %vm1072_vm10 = vweird.f32 %v1921_v28 }
 0x3a9   :  { %v1044_v36 = vsel %vm1043_vm6, %v1917_v32, %v1040_v42  ;;  %v1075_v32 = vand.u32 2147483647, %v1035_v48  ;;  %vm1073_vm12 = vmor %vm1071_vm11, %vm1072_vm10 }
 0x3aa   :  { %v1068_v50 = vsub.f32 1.0, %v1067_v0  ;;  %v1049_v8 = vsel %vm1046_vm8, %v1048_v3, %v1044_v36  ;;  %v1059_v25 = vsel %vm1058_vm7, %v1919_v24, %v1055_v34 }
 0x3ab   :  { %v1064_v54 = vsel %vm1061_vm9, %v1063_v23, %v1059_v25  ;;  %v1083_v63 = vmul.f32 %v1923_v55, %v1049_v8  ;;  %vm1076_vm13 = vcmp.eq.f32.partialorder %v1075_v32, 8.507059e+37 }
 0x3ac   :  { %v1082_v38 = vmul.f32 %v1064_v54, %v2614_v30  ;;  %v1069_v39 = vmul.f32 %v1921_v28, %v1068_v50 }
 0x3ae   :  { %v2654_v10 = vadd.f32 %v1083_v63, %v1082_v38  ;;  %v1070_v35 = vadd.f32 %v1921_v28, %v1069_v39 }
 0x3b0   :  { %1924 = vtanh.f32 %v2654_v10  ;;  %v1074_v62 = vsel %vm1073_vm12, %v1921_v28, %v1070_v35 }
 0x3b1   :  { %v1079_v22 = vsel %vm1076_vm13, %v1078_v26, %v1074_v62 }
 0x3b6   :  { %v1925_v24 = vpop.eup %1924 }
 0x3b7   :  { %v1086_v19 = vmul.f32 %v1925_v24, %v1079_v22 }
 0x3b9   :  { %v1094_v49 = vpack.c.bf16 %v1086_v19, %v1086_v19 }
 0x3bb   :  { %1103 = vmatmul.bf16.vlgmr.msra.gmra.mxu0 %v1094_v49  ;;  %1116 = vmatmul.bf16.vlgmr.msrb.gmra.mxu1 %v1094_v49 }
 0x3bc   :  { %1129 = vmatmul.bf16.vlgmr.msra.gmra.mxu2 %v1094_v49  ;;  %1142 = vmatmul.bf16.vlgmr.msra.gmra.mxu3 %v1094_v49 }
 0x3bd   :  { %1349 = vmatpush.bf16.msra.mxu0 %v2052_v31  ;;  %1362 = vmatpush.bf16.msrb.mxu1 %v2095_v46  ;;  %v2771_v46 = vld [vmem:[#allocation16_spill] sm:$0xff] }
 0x3be   :  { %1375 = vmatpush.bf16.msra.mxu2 %v2078_v40  ;;  %1388 = vmatpush.bf16.msra.mxu3 %v2080_v41  ;;  %v2770_v41 = vld [vmem:[#allocation10_spill] sm:$0xff] }
 0x3c1   :  { %1350 = vmatpush.bf16.msra.mxu0 %v2083_v43  ;;  %1363 = vmatpush.bf16.msrb.mxu1 %v2133_v57 }
 0x3c2   :  { %1376 = vmatpush.bf16.msra.mxu2 %v2114_v51  ;;  %1389 = vmatpush.bf16.msra.mxu3 %v2144_v61 }
 0x3c5   :  { %1351 = vmatpush.bf16.msra.mxu0 %v2121_v53  ;;  %1364 = vmatpush.bf16.msrb.mxu1 %v2177_v9 }
 0x3c6   :  { %1377 = vmatpush.bf16.msra.mxu2 %v2156_v1  ;;  %1390 = vmatpush.bf16.msra.mxu3 %v2159_v2  ;;  %v2772_v2 = vld [vmem:[#allocation11_spill] sm:$0xff] }
 0x3c9   :  { %1352 = vmatpush.bf16.msra.mxu0 %v2165_v4  ;;  %1365 = vmatpush.bf16.msrb.mxu1 %v2212_v20 }
 0x3ca   :  { %1378 = vmatpush.bf16.msra.mxu2 %v2187_v12  ;;  %1391 = vmatpush.bf16.msra.mxu3 %v2189_v13 }
 0x3cd   :  { %1353 = vmatpush.bf16.msra.mxu0 %v2192_v14  ;;  %1366 = vmatpush.bf16.msrb.mxu1 %v2265_v37 }
 0x3ce   :  { %1379 = vmatpush.bf16.msra.mxu2 %v2238_v29  ;;  %1392 = vmatpush.bf16.msra.mxu3 %v2253_v33 }
 0x3d1   :  { %1354 = vmatpush.bf16.msra.mxu0 %v2217_v21  ;;  %1367 = vmatpush.bf16.msrb.mxu1 %v2305_v56  ;;  %v2773_v56 = vld [vmem:[#allocation12_spill] sm:$0xff] }
 0x3d2   :  { %1380 = vmatpush.bf16.msra.mxu2 %v2281_v45  ;;  %1393 = vmatpush.bf16.msra.mxu3 %v2283_v47 }
 0x3d5   :  { %1355 = vmatpush.bf16.msra.mxu0 %v2278_v44  ;;  %1368 = vmatpush.bf16.msrb.mxu1 %v2353_v15 }
 0x3d6   :  { %1381 = vmatpush.bf16.msra.mxu2 %v2307_v58  ;;  %1394 = vmatpush.bf16.msra.mxu3 %v2313_v60 }
 0x3d9   :  { %1356 = vmatpush.bf16.msra.mxu0 %v2310_v59  ;;  %1369 = vmatpush.bf16.msrb.mxu1 %v2364_v18 }
 0x3da   :  { %1382 = vmatpush.bf16.msra.mxu2 %v2329_v5  ;;  %1395 = vmatpush.bf16.msra.mxu3 %v2333_v7 }
 0x438   :  { %v1104_v31 = vpop.f32.mrf.mxu0  ;;  %v1117_v40 = vpop.f32.mrf.mxu1 }
 0x439   :  { %v1147_v43 = vadd.f32 %v1104_v31, %v2770_v41  ;;  %v1148_v51 = vadd.f32 %v1117_v40, %v2771_v46  ;;  %v2774_v31 = vld [vmem:[#allocation3_spill] sm:$0xff] }
 0x43a   :  { %v2775_v41 = vld [vmem:[#allocation19_spill] sm:$0xff] }
 0x43b   :  { %v1753_v53 = vmul.f32 -1.442695, %v1147_v43  ;;  %v1754_v57 = vmul.f32 -1.442695, %v1148_v51 }
 0x43d   :  { %1926 = vpow2.f32 %v1753_v53 }
 0x43e   :  { %1928 = vpow2.f32 %v1754_v57 }
 0x43f   :  { %v1130_v61 = vpop.f32.mrf.mxu2  ;;  %v1143_v1 = vpop.f32.mrf.mxu3 }
 0x440   :  { %v1149_v4 = vadd.f32 %v1130_v61, %v2772_v2  ;;  %v1106_v9 = vpop.f32.mrf.mxu0  ;;  %v1119_v12 = vpop.f32.mrf.mxu1  ;;  %v1150_v58 = vadd.f32 %v1143_v1, %v2773_v56  ;;  %v2776_v61 = vld [vmem:[#allocation14_spill] sm:$0xff] }
 0x442   :  { %v1755_v13 = vmul.f32 -1.442695, %v1149_v4 }
 0x443   :  { %v1927_v14 = vpop.eup %1926 }
 0x444   :  { %v1929_v20 = vpop.eup %1928  ;;  %v1160_v21 = vadd.f32 1.0, %v1927_v14  ;;  %1930 = vpow2.f32 %v1755_v13 }
 0x445   :  { %v1161_v29 = vadd.f32 1.0, %v1929_v20 }
 0x446   :  { %1932 = vrcp.f32 %v1160_v21  ;;  %v1174_v18 = vand.u32 2147483648, %v1160_v21  ;;  %v1172_v52 = vand.u32 2147483647, %v1160_v21  ;;  %vm1168_vm0 = vweird.f32 %v1160_v21 }
 0x447   :  { %1934 = vrcp.f32 %v1161_v29  ;;  %v1132_v33 = vpop.f32.mrf.mxu2  ;;  %v1145_v37 = vpop.f32.mrf.mxu3  ;;  %v1189_v30 = vand.u32 2147483648, %v1161_v29  ;;  %v1187_v17 = vand.u32 2147483647, %v1161_v29  ;;  %vm1183_vm1 = vweird.f32 %v1161_v29 }
 0x448   :  { %v1175_v42 = vor.u32 1.1754944e-38, %v1174_v18  ;;  %vm1173_vm4 = vcmp.eq.f32.partialorder %v1172_v52, 8.507059e+37 }
 0x449   :  { %v1190_v3 = vor.u32 1.1754944e-38, %v1189_v30  ;;  %vm1188_vm5 = vcmp.eq.f32.partialorder %v1187_v17, 8.507059e+37 }
 0x44a   :  { %v1931_v44 = vpop.eup %1930 }
 0x44b   :  { %v1162_v45 = vadd.f32 1.0, %v1931_v44 }
 0x44c   :  { %v1933_v47 = vpop.eup %1932 }
 0x44d   :  { %v1935_v59 = vpop.eup %1934  ;;  %v1164_v60 = vmul.f32 %v1933_v47, %v1160_v21  ;;  %1936 = vrcp.f32 %v1162_v45  ;;  %vm1169_vm14 = vweird.f32 %v1933_v47  ;;  %v1204_v35 = vand.u32 2147483648, %v1162_v45 }
 0x44e   :  { %v1179_v5 = vmul.f32 %v1935_v59, %v1161_v29  ;;  %1938 = vtanh.f32 %v1150_v58  ;;  %vm1184_vm15 = vweird.f32 %v1935_v59  ;;  %vm1170_vm2 = vmor %vm1168_vm0, %vm1169_vm14  ;;  %vm1198_vm7 = vweird.f32 %v1162_v45 }
 0x44f   :  { %v1165_v7 = vsub.f32 1.0, %v1164_v60  ;;  %vm1185_vm3 = vmor %vm1183_vm1, %vm1184_vm15  ;;  %v1202_v11 = vand.u32 2147483647, %v1162_v45  ;;  %v1205_v62 = vor.u32 1.1754944e-38, %v1204_v35 }
 0x450   :  { %v1180_v15 = vsub.f32 1.0, %v1179_v5 }
 0x451   :  { %v1166_v48 = vmul.f32 %v1933_v47, %v1165_v7  ;;  %vm1203_vm9 = vcmp.eq.f32.partialorder %v1202_v11, 8.507059e+37 }
 0x452   :  { %v1181_v27 = vmul.f32 %v1935_v59, %v1180_v15 }
 0x453   :  { %v1937_v16 = vpop.eup %1936  ;;  %v1167_v6 = vadd.f32 %v1933_v47, %v1166_v48 }
 0x454   :  { %v1194_v28 = vmul.f32 %v1937_v16, %v1162_v45  ;;  %v1182_v0 = vadd.f32 %v1935_v59, %v1181_v27  ;;  %v1939_v23 = vpop.eup %1938  ;;  %vm1199_vm6 = vweird.f32 %v1937_v16  ;;  %v2777_v45 = vld [vmem:[#allocation15_spill] sm:$0xff] }
 0x455   :  { %v1171_v34 = vsel %vm1170_vm2, %v1933_v47, %v1167_v6  ;;  %vm1200_vm8 = vmor %vm1198_vm7, %vm1199_vm6 }
 0x456   :  { %v1195_v36 = vsub.f32 1.0, %v1194_v28  ;;  %v1176_v55 = vsel %vm1173_vm4, %v1175_v42, %v1171_v34  ;;  %v1186_v50 = vsel %vm1185_vm3, %v1935_v59, %v1182_v0 }
 0x457   :  { %v1191_v8 = vsel %vm1188_vm5, %v1190_v3, %v1186_v50  ;;  %v1210_v25 = vmul.f32 %v1939_v23, %v1176_v55 }
 0x458   :  { %v1209_v54 = vmul.f32 %v1191_v8, %v2654_v10  ;;  %v1196_v63 = vmul.f32 %v1937_v16, %v1195_v36 }
 0x45a   :  { %v2694_v38 = vadd.f32 %v1210_v25, %v1209_v54  ;;  %v1197_v39 = vadd.f32 %v1937_v16, %v1196_v63 }
 0x45c   :  { %1940 = vtanh.f32 %v2694_v38  ;;  %v1201_v32 = vsel %vm1200_vm8, %v1937_v16, %v1197_v39 }
 0x45d   :  { %v1206_v24 = vsel %vm1203_vm9, %v1205_v62, %v1201_v32 }
 0x462   :  { %v1941_v26 = vpop.eup %1940 }
 0x463   :  { %v1213_v22 = vmul.f32 %v1941_v26, %v1206_v24 }
 0x465   :  { %v1221_v19 = vpack.c.bf16 %v1213_v22, %v1213_v22 }
 0x467   :  { %1230 = vmatmul.bf16.vlgmr.msrb.gmra.mxu0 %v1221_v19  ;;  %1243 = vmatmul.bf16.vlgmr.msra.gmra.mxu1 %v1221_v19 }
 0x468   :  { %1256 = vmatmul.bf16.vlgmr.msrb.gmra.mxu2 %v1221_v19  ;;  %1269 = vmatmul.bf16.vlgmr.msrb.gmra.mxu3 %v1221_v19  ;;  %v1840_v19 = vld [vmem:[%s2744_s3 + $0x30] sm:$0xff] }
 0x4e4   :  { %v1231_v10 = vpop.f32.mrf.mxu0  ;;  %v1244_v49 = vpop.f32.mrf.mxu1 }
 0x4e5   :  { %v1274_v40 = vadd.f32 %v1231_v10, %v2774_v31  ;;  %v1275_v43 = vadd.f32 %v1244_v49, %v2775_v41  ;;  %v1839_v10 = vld [vmem:[%s2744_s3 + $0x28] sm:$0xff]  ;;  %v1838_v49 = vld [vmem:[%s2744_s3 + $0x20] sm:$0xff]  ;;  %v1837_v31 = vld [vmem:[%s2744_s3 + $0x18] sm:$0xff] }
 0x4e7   :  { %v1756_v46 = vmul.f32 -1.442695, %v1274_v40  ;;  %v1757_v51 = vmul.f32 -1.442695, %v1275_v43  ;;  %v2778_v43 = vld [vmem:[#allocation4_spill] sm:$0xff] }
 0x4e9   :  { %1942 = vpow2.f32 %v1756_v46 }
 0x4ea   :  { %1944 = vpow2.f32 %v1757_v51  ;;  %v2779_v51 = vld [vmem:[#allocation20_spill] sm:$0xff] }
 0x4eb   :  { %v1257_v53 = vpop.f32.mrf.mxu2  ;;  %v1270_v57 = vpop.f32.mrf.mxu3 }
 0x4ec   :  { %v1276_v1 = vadd.f32 %v1257_v53, %v2776_v61  ;;  %v1233_v2 = vpop.f32.mrf.mxu0  ;;  %v1246_v4 = vpop.f32.mrf.mxu1  ;;  %v1277_v47 = vadd.f32 %v1270_v57, %v2777_v45  ;;  %v1836_v57 = vld [vmem:[%s2744_s3 + $0x10] sm:$0xff] }
 0x4ed   :  { %v1835_v2 = vld [vmem:[%s2744_s3 + $0x8] sm:$0xff] }
 0x4ee   :  { %v1758_v9 = vmul.f32 -1.442695, %v1276_v1 }
 0x4ef   :  { %v1943_v12 = vpop.eup %1942 }
 0x4f0   :  { %v1945_v13 = vpop.eup %1944  ;;  %v1287_v14 = vadd.f32 1.0, %v1943_v12  ;;  %1946 = vpow2.f32 %v1758_v9  ;;  %v2780_v12 = vld [vmem:[#allocation17_spill] sm:$0xff] }
 0x4f1   :  { %v1288_v20 = vadd.f32 1.0, %v1945_v13 }
 0x4f2   :  { %1948 = vrcp.f32 %v1287_v14  ;;  %v1301_v7 = vand.u32 2147483648, %v1287_v14  ;;  %v1299_v30 = vand.u32 2147483647, %v1287_v14  ;;  %vm1295_vm12 = vweird.f32 %v1287_v14 }
 0x4f3   :  { %1950 = vrcp.f32 %v1288_v20  ;;  %v1259_v21 = vpop.f32.mrf.mxu2  ;;  %v1272_v29 = vpop.f32.mrf.mxu3  ;;  %v1316_v15 = vand.u32 2147483648, %v1288_v20  ;;  %v1314_v52 = vand.u32 2147483647, %v1288_v20  ;;  %vm1310_vm13 = vweird.f32 %v1288_v20 }
 0x4f4   :  { %v1302_v6 = vor.u32 1.1754944e-38, %v1301_v7  ;;  %vm1300_vm0 = vcmp.eq.f32.partialorder %v1299_v30, 8.507059e+37  ;;  %v1834_v21 = vld [vmem:[%s2744_s3] sm:$0xff] }
 0x4f5   :  { %v1317_v42 = vor.u32 1.1754944e-38, %v1316_v15  ;;  %vm1315_vm1 = vcmp.eq.f32.partialorder %v1314_v52, 8.507059e+37 }
 0x4f6   :  { %v1947_v33 = vpop.eup %1946 }
 0x4f7   :  { %v1289_v37 = vadd.f32 1.0, %v1947_v33 }
 0x4f8   :  { %v1949_v44 = vpop.eup %1948 }
 0x4f9   :  { %v1951_v56 = vpop.eup %1950  ;;  %v1291_v58 = vmul.f32 %v1949_v44, %v1287_v14  ;;  %1952 = vrcp.f32 %v1289_v37  ;;  %vm1296_vm10 = vweird.f32 %v1949_v44  ;;  %v1331_v39 = vand.u32 2147483648, %v1289_v37 }
 0x4fa   :  { %v1306_v59 = vmul.f32 %v1951_v56, %v1288_v20  ;;  %1954 = vtanh.f32 %v1277_v47  ;;  %vm1311_vm11 = vweird.f32 %v1951_v56  ;;  %vm1297_vm14 = vmor %vm1295_vm12, %vm1296_vm10  ;;  %vm1325_vm3 = vweird.f32 %v1289_v37 }
 0x4fb   :  { %v1292_v60 = vsub.f32 1.0, %v1291_v58  ;;  %vm1312_vm15 = vmor %vm1310_vm13, %vm1311_vm11  ;;  %v1329_v35 = vand.u32 2147483647, %v1289_v37  ;;  %v1332_v32 = vor.u32 1.1754944e-38, %v1331_v39 }
 0x4fc   :  { %v1307_v5 = vsub.f32 1.0, %v1306_v59 }
 0x4fd   :  { %v1293_v18 = vmul.f32 %v1949_v44, %v1292_v60  ;;  %vm1330_vm5 = vcmp.eq.f32.partialorder %v1329_v35, 8.507059e+37 }
 0x4fe   :  { %v1308_v48 = vmul.f32 %v1951_v56, %v1307_v5  ;;  %v2781_v5 = vld [vmem:[#allocation18_spill] sm:$0xff] }
 0x4ff   :  { %v1953_v27 = vpop.eup %1952  ;;  %v1294_v17 = vadd.f32 %v1949_v44, %v1293_v18 }
 0x500   :  { %v1321_v16 = vmul.f32 %v1953_v27, %v1289_v37  ;;  %v1309_v28 = vadd.f32 %v1951_v56, %v1308_v48  ;;  %v1955_v3 = vpop.eup %1954  ;;  %vm1326_vm2 = vweird.f32 %v1953_v27 }
 0x501   :  { %v1298_v0 = vsel %vm1297_vm14, %v1949_v44, %v1294_v17  ;;  %vm1327_vm4 = vmor %vm1325_vm3, %vm1326_vm2 }
 0x502   :  { %v1322_v34 = vsub.f32 1.0, %v1321_v16  ;;  %v1303_v23 = vsel %vm1300_vm0, %v1302_v6, %v1298_v0  ;;  %v1313_v36 = vsel %vm1312_vm15, %v1951_v56, %v1309_v28 }
 0x503   :  { %v1318_v55 = vsel %vm1315_vm1, %v1317_v42, %v1313_v36  ;;  %v1337_v50 = vmul.f32 %v1955_v3, %v1303_v23 }
 0x504   :  { %v1336_v8 = vmul.f32 %v1318_v55, %v2694_v38  ;;  %v1323_v25 = vmul.f32 %v1953_v27, %v1322_v34  ;;  %v1841_v38 = vld [vmem:[%s2744_s3 + $0x38] sm:$0xff] }
 0x505   :  { %1537 = vmatpush.bf16.msrb.mxu0 %v1841_v38 }
 0x506   :  { %v2702_v54 = vadd.f32 %v1337_v50, %v1336_v8  ;;  %v1324_v63 = vadd.f32 %v1953_v27, %v1323_v25 }
 0x508   :  { %1956 = vtanh.f32 %v2702_v54  ;;  %v1328_v11 = vsel %vm1327_vm4, %v1953_v27, %v1324_v63 }
 0x509   :  { %v1333_v26 = vsel %vm1330_vm5, %v1332_v32, %v1328_v11  ;;  %1538 = vmatpush.bf16.msrb.mxu0 %v1840_v19 }
 0x50d   :  { %1539 = vmatpush.bf16.msrb.mxu0 %v1839_v10 }
 0x50e   :  { %v1957_v62 = vpop.eup %1956 }
 0x50f   :  { %v1340_v24 = vmul.f32 %v1957_v62, %v1333_v26 }
 0x511   :  { %v1348_v22 = vpack.c.bf16 %v1340_v24, %v1340_v24  ;;  %1540 = vmatpush.bf16.msrb.mxu0 %v1838_v49 }
 0x513   :  { %1357 = vmatmul.bf16.vlgmr.msra.gmra.mxu0 %v1348_v22  ;;  %1370 = vmatmul.bf16.vlgmr.msrb.gmra.mxu1 %v1348_v22 }
 0x514   :  { %1383 = vmatmul.bf16.vlgmr.msra.gmra.mxu2 %v1348_v22  ;;  %1396 = vmatmul.bf16.vlgmr.msra.gmra.mxu3 %v1348_v22 }
 0x515   :  { %1541 = vmatpush.bf16.msrb.mxu0 %v1837_v31 }
 0x519   :  { %1542 = vmatpush.bf16.msrb.mxu0 %v1836_v57 }
 0x51d   :  { %1543 = vmatpush.bf16.msrb.mxu0 %v1835_v2 }
 0x521   :  { %1544 = vmatpush.bf16.msrb.mxu0 %v1834_v21 }
 0x590   :  { %v1358_v40 = vpop.f32.mrf.mxu0  ;;  %v1371_v41 = vpop.f32.mrf.mxu1 }
 0x591   :  { %v1401_v46 = vadd.f32 %v1358_v40, %v2778_v43  ;;  %v1402_v53 = vadd.f32 %v1371_v41, %v2779_v51 }
 0x593   :  { %v1759_v61 = vmul.f32 -1.442695, %v1401_v46  ;;  %v1760_v1 = vmul.f32 -1.442695, %v1402_v53 }
 0x595   :  { %1958 = vpow2.f32 %v1759_v61 }
 0x596   :  { %1960 = vpow2.f32 %v1760_v1 }
 0x597   :  { %v1384_v4 = vpop.f32.mrf.mxu2  ;;  %v1397_v9 = vpop.f32.mrf.mxu3 }
 0x598   :  { %v1403_v13 = vadd.f32 %v1384_v4, %v2780_v12  ;;  %v1360_v14 = vpop.f32.mrf.mxu0  ;;  %v1373_v20 = vpop.f32.mrf.mxu1  ;;  %v1404_v7 = vadd.f32 %v1397_v9, %v2781_v5 }
 0x59a   :  { %v1761_v29 = vmul.f32 -1.442695, %v1403_v13 }
 0x59b   :  { %v1959_v33 = vpop.eup %1958 }
 0x59c   :  { %v1961_v37 = vpop.eup %1960  ;;  %v1414_v44 = vadd.f32 1.0, %v1959_v33  ;;  %1962 = vpow2.f32 %v1761_v29 }
 0x59d   :  { %v1415_v45 = vadd.f32 1.0, %v1961_v37 }
 0x59e   :  { %1964 = vrcp.f32 %v1414_v44  ;;  %v1428_v27 = vand.u32 2147483648, %v1414_v44  ;;  %v1426_v6 = vand.u32 2147483647, %v1414_v44  ;;  %vm1422_vm8 = vweird.f32 %v1414_v44 }
 0x59f   :  { %1966 = vrcp.f32 %v1415_v45  ;;  %v1386_v47 = vpop.f32.mrf.mxu2  ;;  %v1399_v56 = vpop.f32.mrf.mxu3  ;;  %v1443_v17 = vand.u32 2147483648, %v1415_v45  ;;  %v1441_v42 = vand.u32 2147483647, %v1415_v45  ;;  %vm1437_vm9 = vweird.f32 %v1415_v45 }
 0x5a0   :  { %v1429_v23 = vor.u32 1.1754944e-38, %v1428_v27  ;;  %vm1427_vm12 = vcmp.eq.f32.partialorder %v1426_v6, 8.507059e+37 }
 0x5a1   :  { %v1444_v55 = vor.u32 1.1754944e-38, %v1443_v17  ;;  %vm1442_vm13 = vcmp.eq.f32.partialorder %v1441_v42, 8.507059e+37 }
 0x5a2   :  { %v1963_v58 = vpop.eup %1962 }
 0x5a3   :  { %v1416_v59 = vadd.f32 1.0, %v1963_v58 }
 0x5a4   :  { %v1965_v60 = vpop.eup %1964 }
 0x5a5   :  { %v1967_v15 = vpop.eup %1966  ;;  %v1418_v18 = vmul.f32 %v1965_v60, %v1414_v44  ;;  %1968 = vrcp.f32 %v1416_v59  ;;  %vm1423_vm6 = vweird.f32 %v1965_v60  ;;  %v1458_v22 = vand.u32 2147483648, %v1416_v59 }
 0x5a6   :  { %v1433_v30 = vmul.f32 %v1967_v15, %v1415_v45  ;;  %1970 = vtanh.f32 %v1404_v7  ;;  %vm1438_vm7 = vweird.f32 %v1967_v15  ;;  %vm1424_vm10 = vmor %vm1422_vm8, %vm1423_vm6  ;;  %vm1452_vm15 = vweird.f32 %v1416_v59 }
 0x5a7   :  { %v1419_v48 = vsub.f32 1.0, %v1418_v18  ;;  %vm1439_vm11 = vmor %vm1437_vm9, %vm1438_vm7  ;;  %v1456_v38 = vand.u32 2147483647, %v1416_v59  ;;  %v1459_v10 = vor.u32 1.1754944e-38, %v1458_v22 }
 0x5a8   :  { %v1434_v52 = vsub.f32 1.0, %v1433_v30 }
 0x5a9   :  { %v1420_v16 = vmul.f32 %v1965_v60, %v1419_v48  ;;  %vm1457_vm1 = vcmp.eq.f32.partialorder %v1456_v38, 8.507059e+37 }
 0x5aa   :  { %v1435_v28 = vmul.f32 %v1967_v15, %v1434_v52 }
 0x5ab   :  { %v1969_v0 = vpop.eup %1968  ;;  %v1421_v3 = vadd.f32 %v1965_v60, %v1420_v16 }
 0x5ac   :  { %v1448_v34 = vmul.f32 %v1969_v0, %v1416_v59  ;;  %v1436_v36 = vadd.f32 %v1967_v15, %v1435_v28  ;;  %v1971_v8 = vpop.eup %1970  ;;  %vm1453_vm14 = vweird.f32 %v1969_v0 }
 0x5ad   :  { %v1425_v50 = vsel %vm1424_vm10, %v1965_v60, %v1421_v3  ;;  %vm1454_vm0 = vmor %vm1452_vm15, %vm1453_vm14 }
 0x5ae   :  { %v1449_v25 = vsub.f32 1.0, %v1448_v34  ;;  %v1430_v63 = vsel %vm1427_vm12, %v1429_v23, %v1425_v50  ;;  %v1440_v39 = vsel %vm1439_vm11, %v1967_v15, %v1436_v36 }
 0x5af   :  { %v1445_v35 = vsel %vm1442_vm13, %v1444_v55, %v1440_v39  ;;  %v1464_v11 = vmul.f32 %v1971_v8, %v1430_v63 }
 0x5b0   :  { %v1463_v32 = vmul.f32 %v1445_v35, %v2702_v54  ;;  %v1450_v62 = vmul.f32 %v1969_v0, %v1449_v25  ;;  %v1845_v54 = vld [vmem:[%s2743_s4] ss:$0 sm:$0xff] }
 0x5b2   :  { %v1465_v26 = vadd.f32 %v1464_v11, %v1463_v32  ;;  %v1451_v24 = vadd.f32 %v1969_v0, %v1450_v62 }
 0x5b4   :  { %1972 = vtanh.f32 %v1465_v26  ;;  %v1455_v19 = vsel %vm1454_vm0, %v1969_v0, %v1451_v24 }
 0x5b5   :  { %v1460_v31 = vsel %vm1457_vm1, %v1459_v10, %v1455_v19 }
 0x5ba   :  { %v1973_v49 = vpop.eup %1972 }
 0x5bb   :  { %v1467_v40 = vmul.f32 %v1973_v49, %v1460_v31 }
 0x5bd   :  { %v1468_v41 = vpack.c.bf16 %v1467_v40, %v1467_v40 }
 0x5bf   :  { %1545 = vmatmul.bf16.vlgmr.msrb.gmra.mxu0 %v1468_v41 }
 0x63c   :  { %v1546_v43 = vpop.f32.mrf.mxu0 }
 0x63d   :  { %v1547_v46 = vadd.f32 %v1845_v54, %v1546_v43 }
 0x63f   :  { %1550 = vst [vmem:[%s2745_s5] sm:$0xff] %v1547_v46 }
 0x644   :  { %v1548_v51 = vpop.f32.mrf.mxu0 }

</bundles_post_ra>
